<compile_context>
chip_gen: v5e
topology: v5e:2x2
jax: 0.10.0
libtpu: 0.0.40
codegen_flags: <defaults>
</compile_context>

<pallas_src>
import functools
import math

import jax
import jax.numpy as jnp
import numpy as np
from jax.experimental import pallas as pl
from jax.experimental.pallas import tpu as pltpu

# Tile targets (clamped to actual dims below).  Sized for v7x's 64 MiB VMEM;
# comfortably within v5e/v6e's 128 MiB.
TM_TARGET = 256          # row (sublane) tiles, align 8
TN_TARGET = 256          # output-column (lane) tiles, align 128 (v6e MXU 256-wide)
TK_TARGET = 512          # reduction tiles, align 128
TQ_TARGET = 256          # attention query tile
TKV_TARGET = 512         # attention key/value tile
VMEM_LIMIT_BYTES = 48 * 1024 * 1024   # explicit scoped-VMEM budget (v7x-safe)
LN_EPS = 1e-5            # nn.LayerNorm default


def _pick_tile(dim, target, align):
    """Largest tile <= target that divides `dim` and is a multiple of `align`;
    falls back to the full dim (always legal for BlockSpecs)."""
    if dim <= target:
        return dim
    t = (target // align) * align
    while t >= align:
        if dim % t == 0:
            return t
        t -= align
    return dim


# ----------------------------- Pallas kernels -------------------------------


def ln_qkv_kernel(x_ref, g_ref, beta_ref, w_ref, bias_ref,
                  q_ref, k_ref, v_ref, xn_ref, *, dh, eps):
    """Fused LayerNorm + per-head QKV projection.

    grid = (B, S_tiles, H), h innermost.  The normalized row tile is computed
    once (h == 0), cached in VMEM as bf16, and reused for all heads.  Outputs
    are written directly in (B*H, S, Dh) layout via the out BlockSpecs.
    """
    h = pl.program_id(2)

    @pl.when(h == 0)
    def _():
        x = x_ref[...].astype(jnp.float32)
        mu = jnp.mean(x, axis=-1, keepdims=True)
        var = jnp.mean(jnp.square(x - mu), axis=-1, keepdims=True)
        xn = (x - mu) * jax.lax.rsqrt(var + eps)
        xn_ref[...] = (xn * g_ref[...] + beta_ref[...]).astype(xn_ref.dtype)

    y = jnp.dot(xn_ref[...], w_ref[...], preferred_element_type=jnp.float32)
    y = y + bias_ref[...]
    q_ref[...] = y[:, 0 * dh:1 * dh].astype(q_ref.dtype)
    k_ref[...] = y[:, 1 * dh:2 * dh].astype(k_ref.dtype)
    v_ref[...] = y[:, 2 * dh:3 * dh].astype(v_ref.dtype)


def flash_attn_kernel(q_ref, k_ref, v_ref, o_ref, m_sc, l_sc, acc_sc, *, scale):
    """Flash-style attention: online softmax over KV tiles (innermost axis)."""
    ki = pl.program_id(2)

    @pl.when(ki == 0)
    def _():
        m_sc[...] = jnp.full(m_sc.shape, -jnp.inf, jnp.float32)
        l_sc[...] = jnp.zeros(l_sc.shape, jnp.float32)
        acc_sc[...] = jnp.zeros(acc_sc.shape, jnp.float32)

    # Contract last dims directly (no explicit k.T / XLU transpose).
    s = jax.lax.dot_general(
        q_ref[...], k_ref[...],
        dimension_numbers=(((1,), (1,)), ((), ())),
        preferred_element_type=jnp.float32) * scale

    m_prev = m_sc[...]
    m_new = jnp.maximum(m_prev, jnp.max(s, axis=-1, keepdims=True))
    alpha = jnp.exp(m_prev - m_new)
    p = jnp.exp(s - m_new)
    l_sc[...] = alpha * l_sc[...] + jnp.sum(p, axis=-1, keepdims=True)
    acc_sc[...] = alpha * acc_sc[...] + jnp.dot(
        p.astype(v_ref.dtype), v_ref[...], preferred_element_type=jnp.float32)
    m_sc[...] = m_new

    @pl.when(ki == pl.num_programs(2) - 1)
    def _():
        inv_l = pl.reciprocal(l_sc[...], approx=True)   # EUP slot, ~free
        o_ref[...] = (acc_sc[...] * inv_l).astype(o_ref.dtype)


def outproj_residual_kernel(a_ref, w_ref, b_ref, r_ref, o_ref, acc_ref):
    """Out-projection with the head merge folded into the grid: reduction over
    heads (innermost), bias + residual fused in the epilogue."""
    h = pl.program_id(3)

    @pl.when(h == 0)
    def _():
        acc_ref[...] = jnp.zeros(acc_ref.shape, jnp.float32)

    acc_ref[...] += jnp.dot(a_ref[...], w_ref[...],
                            preferred_element_type=jnp.float32)

    @pl.when(h == pl.num_programs(3) - 1)
    def _():
        o_ref[...] = (acc_ref[...] + b_ref[...] +
                      r_ref[...].astype(jnp.float32)).astype(o_ref.dtype)


def ln_linear_kernel(x_ref, g_ref, beta_ref, w_ref, bias_ref, o_ref, xn_ref,
                     *, eps, relu):
    """Fused LayerNorm + Linear (used for LN2 -> FF1, with fused ReLU).
    grid = (M_tiles, N_tiles), N innermost; normalized tile cached in VMEM."""
    j = pl.program_id(1)

    @pl.when(j == 0)
    def _():
        x = x_ref[...].astype(jnp.float32)
        mu = jnp.mean(x, axis=-1, keepdims=True)
        var = jnp.mean(jnp.square(x - mu), axis=-1, keepdims=True)
        xn = (x - mu) * jax.lax.rsqrt(var + eps)
        xn_ref[...] = (xn * g_ref[...] + beta_ref[...]).astype(xn_ref.dtype)

    y = jnp.dot(xn_ref[...], w_ref[...], preferred_element_type=jnp.float32)
    y = y + bias_ref[...]
    if relu:
        y = jnp.maximum(y, 0.0)
    o_ref[...] = y.astype(o_ref.dtype)


def linear_residual_kernel(x_ref, w_ref, b_ref, r_ref, o_ref, acc_ref):
    """Tiled matmul with K reduction in the grid (last axis); bias + residual
    fused in the epilogue (used for FF2)."""
    k = pl.program_id(2)

    @pl.when(k == 0)
    def _():
        acc_ref[...] = jnp.zeros(acc_ref.shape, jnp.float32)

    acc_ref[...] += jnp.dot(x_ref[...], w_ref[...],
                            preferred_element_type=jnp.float32)

    @pl.when(k == pl.num_programs(2) - 1)
    def _():
        o_ref[...] = (acc_ref[...] + b_ref[...] +
                      r_ref[...].astype(jnp.float32)).astype(o_ref.dtype)


# ----------------------------- model ----------------------------------------


def init_params(key, embed_dim, num_heads, feedforward_dim):
    ks = jax.random.split(key, 8)

    def lin(kw, kb, fan_in, fan_out):
        bound = 1.0 / math.sqrt(fan_in)
        w = jax.random.uniform(kw, (fan_in, fan_out), jnp.float32, -bound, bound)
        b = jax.random.uniform(kb, (fan_out,), jnp.float32, -bound, bound)
        return w, b

    p = {}
    p["wqkv"], p["bqkv"] = lin(ks[0], ks[1], embed_dim, 3 * embed_dim)
    p["wout"], p["bout"] = lin(ks[2], ks[3], embed_dim, embed_dim)
    p["wff1"], p["bff1"] = lin(ks[4], ks[5], embed_dim, feedforward_dim)
    p["wff2"], p["bff2"] = lin(ks[6], ks[7], feedforward_dim, embed_dim)
    p["g1"] = jnp.ones((embed_dim,), jnp.float32)
    p["b1"] = jnp.zeros((embed_dim,), jnp.float32)
    p["g2"] = jnp.ones((embed_dim,), jnp.float32)
    p["b2"] = jnp.zeros((embed_dim,), jnp.float32)
    return p


def transformer_encoder_layer(x, params, num_heads):
    B, S, E = x.shape
    H = num_heads
    Dh = E // H
    FF = params["wff1"].shape[1]
    M = B * S

    # One-time weight relayout / bf16 cast (tiny parameter-side ops).
    # QKV weight columns (E, 3E) -> (H, E, 3*Dh) matching the PyTorch
    # reshape(B, S, H, 3*Dh) head layout.
    wqkv = params["wqkv"].astype(jnp.bfloat16).reshape(E, H, 3 * Dh)
    wqkv = jnp.transpose(wqkv, (1, 0, 2))                       # (H, E, 3Dh)
    bqkv = params["bqkv"].reshape(H, 1, 3 * Dh)                 # f32
    wout = params["wout"].astype(jnp.bfloat16).reshape(H, Dh, E)  # (H, Dh, E)
    bout = params["bout"].reshape(1, E)
    wff1 = params["wff1"].astype(jnp.bfloat16)                  # (E, FF)
    bff1 = params["bff1"].reshape(1, FF)
    wff2 = params["wff2"].astype(jnp.bfloat16)                  # (FF, E)
    bff2 = params["bff2"].reshape(1, E)
    g1 = params["g1"].reshape(1, E)
    b1 = params["b1"].reshape(1, E)
    g2 = params["g2"].reshape(1, E)
    b2 = params["b2"].reshape(1, E)

    # ---- LN1 + QKV projection (q/k/v written directly in (B*H, S, Dh)) ----
    ts = _pick_tile(S, TM_TARGET, 8)
    q, k, v = pl.pallas_call(
        functools.partial(ln_qkv_kernel, dh=Dh, eps=LN_EPS),
        grid=(B, S // ts, H),
        in_specs=[
            pl.BlockSpec((None, ts, E), lambda b, si, h: (b, si, 0)),
            pl.BlockSpec((1, E), lambda b, si, h: (0, 0)),
            pl.BlockSpec((1, E), lambda b, si, h: (0, 0)),
            pl.BlockSpec((None, E, 3 * Dh), lambda b, si, h: (h, 0, 0)),
            pl.BlockSpec((None, 1, 3 * Dh), lambda b, si, h: (h, 0, 0)),
        ],
        out_specs=[
            pl.BlockSpec((None, ts, Dh), lambda b, si, h: (b * H + h, si, 0)),
            pl.BlockSpec((None, ts, Dh), lambda b, si, h: (b * H + h, si, 0)),
            pl.BlockSpec((None, ts, Dh), lambda b, si, h: (b * H + h, si, 0)),
        ],
        out_shape=[jax.ShapeDtypeStruct((B * H, S, Dh), jnp.bfloat16)] * 3,
        scratch_shapes=[pltpu.VMEM((ts, E), jnp.bfloat16)],
        compiler_params=pltpu.CompilerParams(
            dimension_semantics=("parallel", "parallel", "arbitrary"),
            vmem_limit_bytes=VMEM_LIMIT_BYTES),
    )(x, g1, b1, wqkv, bqkv)

    # ---- flash attention over (B*H, Sq tiles, Skv tiles) ----
    tq = _pick_tile(S, TQ_TARGET, 8)
    tkv = _pick_tile(S, TKV_TARGET, 8)
    scale = 1.0 / math.sqrt(Dh)
    attn = pl.pallas_call(
        functools.partial(flash_attn_kernel, scale=scale),
        grid=(B * H, S // tq, S // tkv),
        in_specs=[
            pl.BlockSpec((None, tq, Dh), lambda b, qi, ki: (b, qi, 0)),
            pl.BlockSpec((None, tkv, Dh), lambda b, qi, ki: (b, ki, 0)),
            pl.BlockSpec((None, tkv, Dh), lambda b, qi, ki: (b, ki, 0)),
        ],
        out_specs=pl.BlockSpec((None, tq, Dh), lambda b, qi, ki: (b, qi, 0)),
        out_shape=jax.ShapeDtypeStruct((B * H, S, Dh), jnp.bfloat16),
        scratch_shapes=[
            pltpu.VMEM((tq, 1), jnp.float32),    # running max
            pltpu.VMEM((tq, 1), jnp.float32),    # running sum
            pltpu.VMEM((tq, Dh), jnp.float32),   # output accumulator
        ],
        compiler_params=pltpu.CompilerParams(
            dimension_semantics=("parallel", "parallel", "arbitrary"),
            vmem_limit_bytes=VMEM_LIMIT_BYTES),
    )(q, k, v)

    # ---- out-projection (+ residual), head-merge folded into the grid ----
    tn = _pick_tile(E, TN_TARGET, 128)
    x1 = pl.pallas_call(
        outproj_residual_kernel,
        grid=(B, S // ts, E // tn, H),
        in_specs=[
            pl.BlockSpec((None, ts, Dh), lambda b, si, j, h: (b * H + h, si, 0)),
            pl.BlockSpec((None, Dh, tn), lambda b, si, j, h: (h, 0, j)),
            pl.BlockSpec((1, tn), lambda b, si, j, h: (0, j)),
            pl.BlockSpec((None, ts, tn), lambda b, si, j, h: (b, si, j)),
        ],
        out_specs=pl.BlockSpec((None, ts, tn), lambda b, si, j, h: (b, si, j)),
        out_shape=jax.ShapeDtypeStruct((B, S, E), jnp.float32),
        scratch_shapes=[pltpu.VMEM((ts, tn), jnp.float32)],
        compiler_params=pltpu.CompilerParams(
            dimension_semantics=("parallel", "parallel", "parallel", "arbitrary"),
            vmem_limit_bytes=VMEM_LIMIT_BYTES),
    )(attn, wout, bout, x)
    # dropout -> identity

    x1_2d = x1.reshape(M, E)   # free reshape (contiguous)

    # ---- LN2 + FF1 (+ fused ReLU) ----
    tm = _pick_tile(M, TM_TARGET, 8)
    tn_ff = _pick_tile(FF, TN_TARGET, 128)
    h_act = pl.pallas_call(
        functools.partial(ln_linear_kernel, eps=LN_EPS, relu=True),
        grid=(M // tm, FF // tn_ff),
        in_specs=[
            pl.BlockSpec((tm, E), lambda i, j: (i, 0)),
            pl.BlockSpec((1, E), lambda i, j: (0, 0)),
            pl.BlockSpec((1, E), lambda i, j: (0, 0)),
            pl.BlockSpec((E, tn_ff), lambda i, j: (0, j)),
            pl.BlockSpec((1, tn_ff), lambda i, j: (0, j)),
        ],
        out_specs=pl.BlockSpec((tm, tn_ff), lambda i, j: (i, j)),
        out_shape=jax.ShapeDtypeStruct((M, FF), jnp.bfloat16),
        scratch_shapes=[pltpu.VMEM((tm, E), jnp.bfloat16)],
        compiler_params=pltpu.CompilerParams(
            dimension_semantics=("parallel", "arbitrary"),
            vmem_limit_bytes=VMEM_LIMIT_BYTES),
    )(x1_2d, g2, b2, wff1, bff1)

    # ---- FF2 (+ residual), K reduction tiled and last in the grid ----
    tk = _pick_tile(FF, TK_TARGET, 128)
    tn2 = _pick_tile(E, TN_TARGET, 128)
    out2d = pl.pallas_call(
        linear_residual_kernel,
        grid=(M // tm, E // tn2, FF // tk),
        in_specs=[
            pl.BlockSpec((tm, tk), lambda i, j, k: (i, k)),
            pl.BlockSpec((tk, tn2), lambda i, j, k: (k, j)),
            pl.BlockSpec((1, tn2), lambda i, j, k: (0, j)),
            pl.BlockSpec((tm, tn2), lambda i, j, k: (i, j)),
        ],
        out_specs=pl.BlockSpec((tm, tn2), lambda i, j, k: (i, j)),
        out_shape=jax.ShapeDtypeStruct((M, E), jnp.float32),
        scratch_shapes=[pltpu.VMEM((tm, tn2), jnp.float32)],
        compiler_params=pltpu.CompilerParams(
            dimension_semantics=("parallel", "parallel", "arbitrary"),
            vmem_limit_bytes=VMEM_LIMIT_BYTES),
    )(h_act, wff2, bff2, x1_2d)
    # dropout -> identity

    return out2d.reshape(B, S, E)


# ----------------------------- reference (plain JAX, f32) --------------------


def reference_forward(x, p, num_heads):
    B, S, E = x.shape
    H = num_heads
    Dh = E // H

    def ln(v, g, b):
        m = jnp.mean(v, axis=-1, keepdims=True)
        var = jnp.mean((v - m) ** 2, axis=-1, keepdims=True)
        return (v - m) / jnp.sqrt(var + 1e-5) * g + b

    residual = x
    xn = ln(x, p["g1"], p["b1"])
    qkv = xn @ p["wqkv"] + p["bqkv"]
    qkv = qkv.reshape(B, S, H, 3 * Dh).transpose(0, 2, 1, 3)
    q, k, v = jnp.split(qkv, 3, axis=-1)
    q = q / math.sqrt(Dh)
    scores = q @ jnp.swapaxes(k, -2, -1)
    w = jax.nn.softmax(scores, axis=-1)
    attn = (w @ v).transpose(0, 2, 1, 3).reshape(B, S, E)
    x1 = attn @ p["wout"] + p["bout"] + residual
    residual = x1
    xn = ln(x1, p["g2"], p["b2"])
    h = jnp.maximum(xn @ p["wff1"] + p["bff1"], 0.0)
    return h @ p["wff2"] + p["bff2"] + residual


# ----------------------------- main ------------------------------------------

if __name__ == "__main__":
    B, S, E, H, FF = 2, 8, 32, 4, 64
    key = jax.random.PRNGKey(0)
    kx, kp = jax.random.split(key)
    x = jax.random.normal(kx, (B, S, E), jnp.float32)
    params = init_params(kp, E, H, FF)

    fwd = jax.jit(transformer_encoder_layer, static_argnums=2)
    out = fwd(x, params, H)
    out = jax.block_until_ready(out)

    ref = reference_forward(x, params, H)
    # Tolerance accounts for bf16 MXU inputs (f32 accumulation) and the
    # approx-reciprocal softmax normalization.
    np.testing.assert_allclose(np.asarray(out), np.asarray(ref),
                               rtol=3e-2, atol=3e-2)

    print("KERNEL_OK")
</pallas_src>

<mosaic_0001>
module attributes {stable_mosaic.version = 11 : i64} {
  func.func @flash_attn_kernel(%arg0: i32, %arg1: i32, %arg2: i32, %arg3: memref<1x8x8xbf16, #tpu.memory_space<vmem>>, %arg4: memref<1x8x8xbf16, #tpu.memory_space<vmem>>, %arg5: memref<1x8x8xbf16, #tpu.memory_space<vmem>>, %arg6: memref<1x8x8xbf16, #tpu.memory_space<vmem>>, %arg7: memref<8x1xf32, #tpu.memory_space<vmem>>, %arg8: memref<8x1xf32, #tpu.memory_space<vmem>>, %arg9: memref<8x8xf32, #tpu.memory_space<vmem>>) attributes {dimension_semantics = [#tpu.dimension_semantics<parallel>, #tpu.dimension_semantics<parallel>, #tpu.dimension_semantics<arbitrary>], iteration_bounds = array<i64: 8, 1, 1>, scalar_prefetch = 0 : i64, scratch_operands = 3 : i64, tpu.core_type = #tpu.core_type<tc>, window_params = [{transform_indices = @transform_0, window_bounds = array<i64: 1, 8, 8>}, {transform_indices = @transform_1, window_bounds = array<i64: 1, 8, 8>}, {transform_indices = @transform_2, window_bounds = array<i64: 1, 8, 8>}, {transform_indices = @transform_3, window_bounds = array<i64: 1, 8, 8>}]} {
    %c0_i32 = arith.constant 0 : i32
    %0 = arith.cmpi eq, %arg2, %c0_i32 : i32
    %1 = arith.extui %0 : i1 to i32
    %c0_i32_0 = arith.constant 0 : i32
    %2 = arith.cmpi ne, %1, %c0_i32_0 : i32
    scf.if %2 {
      %cst_27 = arith.constant 0xFF800000 : f32
      %38 = vector.broadcast %cst_27 : f32 to vector<8x1xf32>
      %c0_28 = arith.constant 0 : index
      %c0_29 = arith.constant 0 : index
      %39 = vector.load %arg7[%c0_28, %c0_29] : memref<8x1xf32, #tpu.memory_space<vmem>>, vector<8x1xf32>
      tpu.vector_store %arg7[%c0_28, %c0_29], %38 {strides = array<i32>} : memref<8x1xf32, #tpu.memory_space<vmem>>, vector<8x1xf32>,
      %cst_30 = arith.constant 0.000000e+00 : f32
      %40 = vector.broadcast %cst_30 : f32 to vector<8x1xf32>
      %c0_31 = arith.constant 0 : index
      %c0_32 = arith.constant 0 : index
      %41 = vector.load %arg8[%c0_31, %c0_32] : memref<8x1xf32, #tpu.memory_space<vmem>>, vector<8x1xf32>
      tpu.vector_store %arg8[%c0_31, %c0_32], %40 {strides = array<i32>} : memref<8x1xf32, #tpu.memory_space<vmem>>, vector<8x1xf32>,
      %cst_33 = arith.constant 0.000000e+00 : f32
      %42 = vector.broadcast %cst_33 : f32 to vector<8x8xf32>
      %c0_34 = arith.constant 0 : index
      %c0_35 = arith.constant 0 : index
      %43 = vector.load %arg9[%c0_34, %c0_35] : memref<8x8xf32, #tpu.memory_space<vmem>>, vector<8x8xf32>
      tpu.vector_store %arg9[%c0_34, %c0_35], %42 {strides = array<i32>} : memref<8x8xf32, #tpu.memory_space<vmem>>, vector<8x8xf32>,
    } else {
    }
    %c0 = arith.constant 0 : index
    %c0_1 = arith.constant 0 : index
    %c0_2 = arith.constant 0 : index
    %3 = vector.load %arg3[%c0, %c0_1, %c0_2] : memref<1x8x8xbf16, #tpu.memory_space<vmem>>, vector<1x8x8xbf16>
    %4 = vector.shape_cast %3 : vector<1x8x8xbf16> to vector<8x8xbf16>
    %c0_3 = arith.constant 0 : index
    %c0_4 = arith.constant 0 : index
    %c0_5 = arith.constant 0 : index
    %5 = vector.load %arg4[%c0_3, %c0_4, %c0_5] : memref<1x8x8xbf16, #tpu.memory_space<vmem>>, vector<1x8x8xbf16>
    %6 = vector.shape_cast %5 : vector<1x8x8xbf16> to vector<8x8xbf16>
    %cst = arith.constant dense<0.000000e+00> : vector<8x8xf32>
    %7 = tpu.matmul %4, %6, %cst {dimension_numbers = #tpu.dot_dimension_numbers<[1], [1], [0], [0], [0, 0, 1, 0], [], []>} : vector<8x8xbf16>, vector<8x8xbf16>, vector<8x8xf32> -> vector<8x8xf32>
    %cst_6 = arith.constant 0.353553385 : f32
    %8 = vector.broadcast %cst_6 : f32 to vector<8x8xf32>
    %9 = arith.mulf %7, %8 : vector<8x8xf32>
    %c0_7 = arith.constant 0 : index
    %c0_8 = arith.constant 0 : index
    %10 = vector.load %arg7[%c0_7, %c0_8] : memref<8x1xf32, #tpu.memory_space<vmem>>, vector<8x1xf32>
    %cst_9 = arith.constant dense<0xFF800000> : vector<8xf32>
    %11 = vector.multi_reduction <maximumf>, %9, %cst_9 [1] : vector<8x8xf32> to vector<8xf32>
    %12 = vector.shape_cast %11 : vector<8xf32> to vector<8x1xf32>
    %13 = arith.maximumf %10, %12 : vector<8x1xf32>
    %14 = arith.subf %10, %13 : vector<8x1xf32>
    %15 = math.exp %14 : vector<8x1xf32>
    %16 = vector.broadcast %13 : vector<8x1xf32> to vector<8x8xf32>
    %17 = arith.subf %9, %16 : vector<8x8xf32>
    %18 = math.exp %17 : vector<8x8xf32>
    %c0_10 = arith.constant 0 : index
    %c0_11 = arith.constant 0 : index
    %19 = vector.load %arg8[%c0_10, %c0_11] : memref<8x1xf32, #tpu.memory_space<vmem>>, vector<8x1xf32>
    %20 = arith.mulf %15, %19 : vector<8x1xf32>
    %cst_12 = arith.constant dense<0.000000e+00> : vector<8xf32>
    %21 = vector.multi_reduction <add>, %18, %cst_12 [1] : vector<8x8xf32> to vector<8xf32>
    %22 = vector.shape_cast %21 : vector<8xf32> to vector<8x1xf32>
    %23 = arith.addf %20, %22 : vector<8x1xf32>
    %c0_13 = arith.constant 0 : index
    %c0_14 = arith.constant 0 : index
    %24 = vector.load %arg8[%c0_13, %c0_14] : memref<8x1xf32, #tpu.memory_space<vmem>>, vector<8x1xf32>
    tpu.vector_store %arg8[%c0_13, %c0_14], %23 {strides = array<i32>} : memref<8x1xf32, #tpu.memory_space<vmem>>, vector<8x1xf32>,
    %c0_15 = arith.constant 0 : index
    %c0_16 = arith.constant 0 : index
    %25 = vector.load %arg9[%c0_15, %c0_16] : memref<8x8xf32, #tpu.memory_space<vmem>>, vector<8x8xf32>
    %26 = vector.broadcast %15 : vector<8x1xf32> to vector<8x8xf32>
    %27 = arith.mulf %26, %25 : vector<8x8xf32>
    %28 = arith.truncf %18 : vector<8x8xf32> to vector<8x8xbf16>
    %c0_17 = arith.constant 0 : index
    %c0_18 = arith.constant 0 : index
    %c0_19 = arith.constant 0 : index
    %29 = vector.load %arg5[%c0_17, %c0_18, %c0_19] : memref<1x8x8xbf16, #tpu.memory_space<vmem>>, vector<1x8x8xbf16>
    %30 = vector.shape_cast %29 : vector<1x8x8xbf16> to vector<8x8xbf16>
    %cst_20 = arith.constant dense<0.000000e+00> : vector<8x8xf32>
    %31 = tpu.matmul %28, %30, %cst_20 {dimension_numbers = #tpu.dot_dimension_numbers<[1], [0], [0], [1], [0, 0, 1, 1], [], []>} : vector<8x8xbf16>, vector<8x8xbf16>, vector<8x8xf32> -> vector<8x8xf32>
    %32 = arith.addf %27, %31 : vector<8x8xf32>
    %c0_21 = arith.constant 0 : index
    %c0_22 = arith.constant 0 : index
    %33 = vector.load %arg9[%c0_21, %c0_22] : memref<8x8xf32, #tpu.memory_space<vmem>>, vector<8x8xf32>
    tpu.vector_store %arg9[%c0_21, %c0_22], %32 {strides = array<i32>} : memref<8x8xf32, #tpu.memory_space<vmem>>, vector<8x8xf32>,
    %c0_23 = arith.constant 0 : index
    %c0_24 = arith.constant 0 : index
    %34 = vector.load %arg7[%c0_23, %c0_24] : memref<8x1xf32, #tpu.memory_space<vmem>>, vector<8x1xf32>
    tpu.vector_store %arg7[%c0_23, %c0_24], %13 {strides = array<i32>} : memref<8x1xf32, #tpu.memory_space<vmem>>, vector<8x1xf32>,
    %c0_i32_25 = arith.constant 0 : i32
    %35 = arith.cmpi eq, %arg2, %c0_i32_25 : i32
    %36 = arith.extui %35 : i1 to i32
    %c0_i32_26 = arith.constant 0 : i32
    %37 = arith.cmpi ne, %36, %c0_i32_26 : i32
    scf.if %37 {
      %c0_27 = arith.constant 0 : index
      %c0_28 = arith.constant 0 : index
      %38 = vector.load %arg8[%c0_27, %c0_28] : memref<8x1xf32, #tpu.memory_space<vmem>>, vector<8x1xf32>
      %39 = tpu.reciprocal %38 {approx = true} : vector<8x1xf32> -> vector<8x1xf32>
      %c0_29 = arith.constant 0 : index
      %c0_30 = arith.constant 0 : index
      %40 = vector.load %arg9[%c0_29, %c0_30] : memref<8x8xf32, #tpu.memory_space<vmem>>, vector<8x8xf32>
      %41 = vector.broadcast %39 : vector<8x1xf32> to vector<8x8xf32>
      %42 = arith.mulf %40, %41 : vector<8x8xf32>
      %43 = arith.truncf %42 : vector<8x8xf32> to vector<8x8xbf16>
      %c0_31 = arith.constant 0 : index
      %c0_32 = arith.constant 0 : index
      %c0_33 = arith.constant 0 : index
      %44 = vector.load %arg6[%c0_31, %c0_32, %c0_33] : memref<1x8x8xbf16, #tpu.memory_space<vmem>>, vector<1x8x8xbf16>
      %45 = vector.shape_cast %44 : vector<1x8x8xbf16> to vector<8x8xbf16>
      %46 = vector.shape_cast %43 : vector<8x8xbf16> to vector<1x8x8xbf16>
      tpu.vector_store %arg6[%c0_31, %c0_32, %c0_33], %46 {strides = array<i32>} : memref<1x8x8xbf16, #tpu.memory_space<vmem>>, vector<1x8x8xbf16>,
    } else {
    }
    return
  }
  func.func @transform_0(%arg0: i32, %arg1: i32, %arg2: i32) -> (i32, i32, i32) {
    %c0_i32 = arith.constant 0 : i32
    %c0_i32_0 = arith.constant 0 : i32
    return %arg0, %arg1, %c0_i32 : i32, i32, i32
  }
  func.func @transform_1(%arg0: i32, %arg1: i32, %arg2: i32) -> (i32, i32, i32) {
    %c0_i32 = arith.constant 0 : i32
    %c0_i32_0 = arith.constant 0 : i32
    return %arg0, %arg2, %c0_i32 : i32, i32, i32
  }
  func.func @transform_2(%arg0: i32, %arg1: i32, %arg2: i32) -> (i32, i32, i32) {
    %c0_i32 = arith.constant 0 : i32
    %c0_i32_0 = arith.constant 0 : i32
    return %arg0, %arg2, %c0_i32 : i32, i32, i32
  }
  func.func @transform_3(%arg0: i32, %arg1: i32, %arg2: i32) -> (i32, i32, i32) {
    %c0_i32 = arith.constant 0 : i32
    %c0_i32_0 = arith.constant 0 : i32
    return %arg0, %arg1, %c0_i32 : i32, i32, i32
  }
}

module attributes {stable_mosaic.version = 11 : i64} {
  func.func @outproj_residual_kernel(%arg0: i32, %arg1: i32, %arg2: i32, %arg3: i32, %arg4: memref<1x8x8xbf16, #tpu.memory_space<vmem>>, %arg5: memref<1x8x32xbf16, #tpu.memory_space<vmem>>, %arg6: memref<1x32xf32, #tpu.memory_space<vmem>>, %arg7: memref<1x8x32xf32, #tpu.memory_space<vmem>>, %arg8: memref<1x8x32xf32, #tpu.memory_space<vmem>>, %arg9: memref<8x32xf32, #tpu.memory_space<vmem>>) attributes {dimension_semantics = [#tpu.dimension_semantics<parallel>, #tpu.dimension_semantics<parallel>, #tpu.dimension_semantics<parallel>, #tpu.dimension_semantics<arbitrary>], iteration_bounds = array<i64: 2, 1, 1, 4>, scalar_prefetch = 0 : i64, scratch_operands = 1 : i64, tpu.core_type = #tpu.core_type<tc>, window_params = [{transform_indices = @transform_0, window_bounds = array<i64: 1, 8, 8>}, {transform_indices = @transform_1, window_bounds = array<i64: 1, 8, 32>}, {transform_indices = @transform_2, window_bounds = array<i64: 1, 32>}, {transform_indices = @transform_3, window_bounds = array<i64: 1, 8, 32>}, {transform_indices = @transform_4, window_bounds = array<i64: 1, 8, 32>}]} {
    %c0_i32 = arith.constant 0 : i32
    %0 = arith.cmpi eq, %arg3, %c0_i32 : i32
    %1 = arith.extui %0 : i1 to i32
    %c0_i32_0 = arith.constant 0 : i32
    %2 = arith.cmpi ne, %1, %c0_i32_0 : i32
    scf.if %2 {
      %cst_11 = arith.constant 0.000000e+00 : f32
      %14 = vector.broadcast %cst_11 : f32 to vector<8x32xf32>
      %c0_12 = arith.constant 0 : index
      %c0_13 = arith.constant 0 : index
      %15 = vector.load %arg9[%c0_12, %c0_13] : memref<8x32xf32, #tpu.memory_space<vmem>>, vector<8x32xf32>
      tpu.vector_store %arg9[%c0_12, %c0_13], %14 {strides = array<i32>} : memref<8x32xf32, #tpu.memory_space<vmem>>, vector<8x32xf32>,
    } else {
    }
    %c0 = arith.constant 0 : index
    %c0_1 = arith.constant 0 : index
    %3 = vector.load %arg9[%c0, %c0_1] : memref<8x32xf32, #tpu.memory_space<vmem>>, vector<8x32xf32>
    %c0_2 = arith.constant 0 : index
    %c0_3 = arith.constant 0 : index
    %c0_4 = arith.constant 0 : index
    %4 = vector.load %arg4[%c0_2, %c0_3, %c0_4] : memref<1x8x8xbf16, #tpu.memory_space<vmem>>, vector<1x8x8xbf16>
    %5 = vector.shape_cast %4 : vector<1x8x8xbf16> to vector<8x8xbf16>
    %c0_5 = arith.constant 0 : index
    %c0_6 = arith.constant 0 : index
    %c0_7 = arith.constant 0 : index
    %6 = vector.load %arg5[%c0_5, %c0_6, %c0_7] : memref<1x8x32xbf16, #tpu.memory_space<vmem>>, vector<1x8x32xbf16>
    %7 = vector.shape_cast %6 : vector<1x8x32xbf16> to vector<8x32xbf16>
    %cst = arith.constant dense<0.000000e+00> : vector<8x32xf32>
    %8 = tpu.matmul %5, %7, %cst {dimension_numbers = #tpu.dot_dimension_numbers<[1], [0], [0], [1], [0, 0, 1, 1], [], []>} : vector<8x8xbf16>, vector<8x32xbf16>, vector<8x32xf32> -> vector<8x32xf32>
    %9 = arith.addf %3, %8 : vector<8x32xf32>
    %c0_8 = arith.constant 0 : index
    %c0_9 = arith.constant 0 : index
    %10 = vector.load %arg9[%c0_8, %c0_9] : memref<8x32xf32, #tpu.memory_space<vmem>>, vector<8x32xf32>
    tpu.vector_store %arg9[%c0_8, %c0_9], %9 {strides = array<i32>} : memref<8x32xf32, #tpu.memory_space<vmem>>, vector<8x32xf32>,
    %c3_i32 = arith.constant 3 : i32
    %11 = arith.cmpi eq, %arg3, %c3_i32 : i32
    %12 = arith.extui %11 : i1 to i32
    %c0_i32_10 = arith.constant 0 : i32
    %13 = arith.cmpi ne, %12, %c0_i32_10 : i32
    scf.if %13 {
      %c0_11 = arith.constant 0 : index
      %c0_12 = arith.constant 0 : index
      %14 = vector.load %arg9[%c0_11, %c0_12] : memref<8x32xf32, #tpu.memory_space<vmem>>, vector<8x32xf32>
      %c0_13 = arith.constant 0 : index
      %c0_14 = arith.constant 0 : index
      %15 = vector.load %arg6[%c0_13, %c0_14] : memref<1x32xf32, #tpu.memory_space<vmem>>, vector<1x32xf32>
      %16 = vector.broadcast %15 : vector<1x32xf32> to vector<8x32xf32>
      %17 = arith.addf %14, %16 : vector<8x32xf32>
      %c0_15 = arith.constant 0 : index
      %c0_16 = arith.constant 0 : index
      %c0_17 = arith.constant 0 : index
      %18 = vector.load %arg7[%c0_15, %c0_16, %c0_17] : memref<1x8x32xf32, #tpu.memory_space<vmem>>, vector<1x8x32xf32>
      %19 = vector.shape_cast %18 : vector<1x8x32xf32> to vector<8x32xf32>
      %20 = arith.addf %17, %19 : vector<8x32xf32>
      %c0_18 = arith.constant 0 : index
      %c0_19 = arith.constant 0 : index
      %c0_20 = arith.constant 0 : index
      %21 = vector.load %arg8[%c0_18, %c0_19, %c0_20] : memref<1x8x32xf32, #tpu.memory_space<vmem>>, vector<1x8x32xf32>
      %22 = vector.shape_cast %21 : vector<1x8x32xf32> to vector<8x32xf32>
      %23 = vector.shape_cast %20 : vector<8x32xf32> to vector<1x8x32xf32>
      tpu.vector_store %arg8[%c0_18, %c0_19, %c0_20], %23 {strides = array<i32>} : memref<1x8x32xf32, #tpu.memory_space<vmem>>, vector<1x8x32xf32>,
    } else {
    }
    return
  }
  func.func @transform_0(%arg0: i32, %arg1: i32, %arg2: i32, %arg3: i32) -> (i32, i32, i32) {
    %c4_i32 = arith.constant 4 : i32
    %0 = arith.muli %arg0, %c4_i32 : i32
    %1 = arith.addi %0, %arg3 : i32
    %c0_i32 = arith.constant 0 : i32
    %c0_i32_0 = arith.constant 0 : i32
    return %1, %arg1, %c0_i32 : i32, i32, i32
  }
  func.func @transform_1(%arg0: i32, %arg1: i32, %arg2: i32, %arg3: i32) -> (i32, i32, i32) {
    %c0_i32 = arith.constant 0 : i32
    %c0_i32_0 = arith.constant 0 : i32
    return %arg3, %c0_i32, %arg2 : i32, i32, i32
  }
  func.func @transform_2(%arg0: i32, %arg1: i32, %arg2: i32, %arg3: i32) -> (i32, i32) {
    %c0_i32 = arith.constant 0 : i32
    %c0_i32_0 = arith.constant 0 : i32
    return %c0_i32, %arg2 : i32, i32
  }
  func.func @transform_3(%arg0: i32, %arg1: i32, %arg2: i32, %arg3: i32) -> (i32, i32, i32) {
    %c0_i32 = arith.constant 0 : i32
    return %arg0, %arg1, %arg2 : i32, i32, i32
  }
  func.func @transform_4(%arg0: i32, %arg1: i32, %arg2: i32, %arg3: i32) -> (i32, i32, i32) {
    %c0_i32 = arith.constant 0 : i32
    return %arg0, %arg1, %arg2 : i32, i32, i32
  }
}

module attributes {stable_mosaic.version = 11 : i64} {
  func.func @ln_qkv_kernel(%arg0: i32, %arg1: i32, %arg2: i32, %arg3: memref<1x8x32xf32, #tpu.memory_space<vmem>>, %arg4: memref<1x32xf32, #tpu.memory_space<vmem>>, %arg5: memref<1x32xf32, #tpu.memory_space<vmem>>, %arg6: memref<1x32x24xbf16, #tpu.memory_space<vmem>>, %arg7: memref<1x1x24xf32, #tpu.memory_space<vmem>>, %arg8: memref<1x8x8xbf16, #tpu.memory_space<vmem>>, %arg9: memref<1x8x8xbf16, #tpu.memory_space<vmem>>, %arg10: memref<1x8x8xbf16, #tpu.memory_space<vmem>>, %arg11: memref<8x32xbf16, #tpu.memory_space<vmem>>) attributes {dimension_semantics = [#tpu.dimension_semantics<parallel>, #tpu.dimension_semantics<parallel>, #tpu.dimension_semantics<arbitrary>], iteration_bounds = array<i64: 2, 1, 4>, scalar_prefetch = 0 : i64, scratch_operands = 1 : i64, tpu.core_type = #tpu.core_type<tc>, window_params = [{transform_indices = @transform_0, window_bounds = array<i64: 1, 8, 32>}, {pipeline_mode = #tpu.pipeline_mode<synchronous>, transform_indices = @transform_1, window_bounds = array<i64: 1, 32>}, {pipeline_mode = #tpu.pipeline_mode<synchronous>, transform_indices = @transform_2, window_bounds = array<i64: 1, 32>}, {transform_indices = @transform_3, window_bounds = array<i64: 1, 32, 24>}, {transform_indices = @transform_4, window_bounds = array<i64: 1, 1, 24>}, {transform_indices = @transform_5, window_bounds = array<i64: 1, 8, 8>}, {transform_indices = @transform_6, window_bounds = array<i64: 1, 8, 8>}, {transform_indices = @transform_7, window_bounds = array<i64: 1, 8, 8>}]} {
    %c0_i32 = arith.constant 0 : i32
    %0 = arith.cmpi eq, %arg2, %c0_i32 : i32
    %1 = arith.extui %0 : i1 to i32
    %c0_i32_0 = arith.constant 0 : i32
    %2 = arith.cmpi ne, %1, %c0_i32_0 : i32
    scf.if %2 {
      %c0_17 = arith.constant 0 : index
      %c0_18 = arith.constant 0 : index
      %c0_19 = arith.constant 0 : index
      %26 = vector.load %arg3[%c0_17, %c0_18, %c0_19] : memref<1x8x32xf32, #tpu.memory_space<vmem>>, vector<1x8x32xf32>
      %27 = vector.shape_cast %26 : vector<1x8x32xf32> to vector<8x32xf32>
      %cst_20 = arith.constant dense<0.000000e+00> : vector<8xf32>
      %28 = vector.multi_reduction <add>, %27, %cst_20 [1] : vector<8x32xf32> to vector<8xf32>
      %29 = vector.shape_cast %28 : vector<8xf32> to vector<8x1xf32>
      %cst_21 = arith.constant 3.200000e+01 : f32
      %30 = vector.broadcast %cst_21 : f32 to vector<8x1xf32>
      %31 = arith.divf %29, %30 : vector<8x1xf32>
      %32 = vector.broadcast %31 : vector<8x1xf32> to vector<8x32xf32>
      %33 = arith.subf %27, %32 : vector<8x32xf32>
      %34 = arith.mulf %33, %33 : vector<8x32xf32>
      %cst_22 = arith.constant dense<0.000000e+00> : vector<8xf32>
      %35 = vector.multi_reduction <add>, %34, %cst_22 [1] : vector<8x32xf32> to vector<8xf32>
      %36 = vector.shape_cast %35 : vector<8xf32> to vector<8x1xf32>
      %cst_23 = arith.constant 3.200000e+01 : f32
      %37 = vector.broadcast %cst_23 : f32 to vector<8x1xf32>
      %38 = arith.divf %36, %37 : vector<8x1xf32>
      %39 = vector.broadcast %31 : vector<8x1xf32> to vector<8x32xf32>
      %40 = arith.subf %27, %39 : vector<8x32xf32>
      %cst_24 = arith.constant 9.99999974E-6 : f32
      %41 = vector.broadcast %cst_24 : f32 to vector<8x1xf32>
      %42 = arith.addf %38, %41 : vector<8x1xf32>
      %43 = math.rsqrt %42 : vector<8x1xf32>
      %44 = vector.broadcast %43 : vector<8x1xf32> to vector<8x32xf32>
      %45 = arith.mulf %40, %44 : vector<8x32xf32>
      %c0_25 = arith.constant 0 : index
      %c0_26 = arith.constant 0 : index
      %46 = vector.load %arg4[%c0_25, %c0_26] : memref<1x32xf32, #tpu.memory_space<vmem>>, vector<1x32xf32>
      %47 = vector.broadcast %46 : vector<1x32xf32> to vector<8x32xf32>
      %48 = arith.mulf %45, %47 : vector<8x32xf32>
      %c0_27 = arith.constant 0 : index
      %c0_28 = arith.constant 0 : index
      %49 = vector.load %arg5[%c0_27, %c0_28] : memref<1x32xf32, #tpu.memory_space<vmem>>, vector<1x32xf32>
      %50 = vector.broadcast %49 : vector<1x32xf32> to vector<8x32xf32>
      %51 = arith.addf %48, %50 : vector<8x32xf32>
      %52 = arith.truncf %51 : vector<8x32xf32> to vector<8x32xbf16>
      %c0_29 = arith.constant 0 : index
      %c0_30 = arith.constant 0 : index
      %53 = vector.load %arg11[%c0_29, %c0_30] : memref<8x32xbf16, #tpu.memory_space<vmem>>, vector<8x32xbf16>
      tpu.vector_store %arg11[%c0_29, %c0_30], %52 {strides = array<i32>} : memref<8x32xbf16, #tpu.memory_space<vmem>>, vector<8x32xbf16>,
    } else {
    }
    %c0 = arith.constant 0 : index
    %c0_1 = arith.constant 0 : index
    %3 = vector.load %arg11[%c0, %c0_1] : memref<8x32xbf16, #tpu.memory_space<vmem>>, vector<8x32xbf16>
    %c0_2 = arith.constant 0 : index
    %c0_3 = arith.constant 0 : index
    %c0_4 = arith.constant 0 : index
    %4 = vector.load %arg6[%c0_2, %c0_3, %c0_4] : memref<1x32x24xbf16, #tpu.memory_space<vmem>>, vector<1x32x24xbf16>
    %5 = vector.shape_cast %4 : vector<1x32x24xbf16> to vector<32x24xbf16>
    %cst = arith.constant dense<0.000000e+00> : vector<8x24xf32>
    %6 = tpu.matmul %3, %5, %cst {dimension_numbers = #tpu.dot_dimension_numbers<[1], [0], [0], [1], [0, 0, 1, 1], [], []>} : vector<8x32xbf16>, vector<32x24xbf16>, vector<8x24xf32> -> vector<8x24xf32>
    %c0_5 = arith.constant 0 : index
    %c0_6 = arith.constant 0 : index
    %c0_7 = arith.constant 0 : index
    %7 = vector.load %arg7[%c0_5, %c0_6, %c0_7] : memref<1x1x24xf32, #tpu.memory_space<vmem>>, vector<1x1x24xf32>
    %8 = vector.shape_cast %7 : vector<1x1x24xf32> to vector<1x24xf32>
    %9 = vector.broadcast %8 : vector<1x24xf32> to vector<8x24xf32>
    %10 = arith.addf %6, %9 : vector<8x24xf32>
    %11 = vector.extract_strided_slice %10 {offsets = [0, 0], sizes = [8, 8], strides = [1, 1]} : vector<8x24xf32> to vector<8x8xf32>
    %12 = arith.truncf %11 : vector<8x8xf32> to vector<8x8xbf16>
    %c0_8 = arith.constant 0 : index
    %c0_9 = arith.constant 0 : index
    %c0_10 = arith.constant 0 : index
    %13 = vector.load %arg8[%c0_8, %c0_9, %c0_10] : memref<1x8x8xbf16, #tpu.memory_space<vmem>>, vector<1x8x8xbf16>
    %14 = vector.shape_cast %13 : vector<1x8x8xbf16> to vector<8x8xbf16>
    %15 = vector.shape_cast %12 : vector<8x8xbf16> to vector<1x8x8xbf16>
    tpu.vector_store %arg8[%c0_8, %c0_9, %c0_10], %15 {strides = array<i32>} : memref<1x8x8xbf16, #tpu.memory_space<vmem>>, vector<1x8x8xbf16>,
    %16 = vector.extract_strided_slice %10 {offsets = [0, 8], sizes = [8, 8], strides = [1, 1]} : vector<8x24xf32> to vector<8x8xf32>
    %17 = arith.truncf %16 : vector<8x8xf32> to vector<8x8xbf16>
    %c0_11 = arith.constant 0 : index
    %c0_12 = arith.constant 0 : index
    %c0_13 = arith.constant 0 : index
    %18 = vector.load %arg9[%c0_11, %c0_12, %c0_13] : memref<1x8x8xbf16, #tpu.memory_space<vmem>>, vector<1x8x8xbf16>
    %19 = vector.shape_cast %18 : vector<1x8x8xbf16> to vector<8x8xbf16>
    %20 = vector.shape_cast %17 : vector<8x8xbf16> to vector<1x8x8xbf16>
    tpu.vector_store %arg9[%c0_11, %c0_12, %c0_13], %20 {strides = array<i32>} : memref<1x8x8xbf16, #tpu.memory_space<vmem>>, vector<1x8x8xbf16>,
    %21 = vector.extract_strided_slice %10 {offsets = [0, 16], sizes = [8, 8], strides = [1, 1]} : vector<8x24xf32> to vector<8x8xf32>
    %22 = arith.truncf %21 : vector<8x8xf32> to vector<8x8xbf16>
    %c0_14 = arith.constant 0 : index
    %c0_15 = arith.constant 0 : index
    %c0_16 = arith.constant 0 : index
    %23 = vector.load %arg10[%c0_14, %c0_15, %c0_16] : memref<1x8x8xbf16, #tpu.memory_space<vmem>>, vector<1x8x8xbf16>
    %24 = vector.shape_cast %23 : vector<1x8x8xbf16> to vector<8x8xbf16>
    %25 = vector.shape_cast %22 : vector<8x8xbf16> to vector<1x8x8xbf16>
    tpu.vector_store %arg10[%c0_14, %c0_15, %c0_16], %25 {strides = array<i32>} : memref<1x8x8xbf16, #tpu.memory_space<vmem>>, vector<1x8x8xbf16>,
    return
  }
  func.func @transform_0(%arg0: i32, %arg1: i32, %arg2: i32) -> (i32, i32, i32) {
    %c0_i32 = arith.constant 0 : i32
    %c0_i32_0 = arith.constant 0 : i32
    return %arg0, %arg1, %c0_i32 : i32, i32, i32
  }
  func.func @transform_1(%arg0: i32, %arg1: i32, %arg2: i32) -> (i32, i32) {
    %c0_i32 = arith.constant 0 : i32
    %c0_i32_0 = arith.constant 0 : i32
    %c0_i32_1 = arith.constant 0 : i32
    return %c0_i32, %c0_i32_0 : i32, i32
  }
  func.func @transform_2(%arg0: i32, %arg1: i32, %arg2: i32) -> (i32, i32) {
    %c0_i32 = arith.constant 0 : i32
    %c0_i32_0 = arith.constant 0 : i32
    %c0_i32_1 = arith.constant 0 : i32
    return %c0_i32, %c0_i32_0 : i32, i32
  }
  func.func @transform_3(%arg0: i32, %arg1: i32, %arg2: i32) -> (i32, i32, i32) {
    %c0_i32 = arith.constant 0 : i32
    %c0_i32_0 = arith.constant 0 : i32
    %c0_i32_1 = arith.constant 0 : i32
    return %arg2, %c0_i32, %c0_i32_0 : i32, i32, i32
  }
  func.func @transform_4(%arg0: i32, %arg1: i32, %arg2: i32) -> (i32, i32, i32) {
    %c0_i32 = arith.constant 0 : i32
    %c0_i32_0 = arith.constant 0 : i32
    %c0_i32_1 = arith.constant 0 : i32
    return %arg2, %c0_i32, %c0_i32_0 : i32, i32, i32
  }
  func.func @transform_5(%arg0: i32, %arg1: i32, %arg2: i32) -> (i32, i32, i32) {
    %c4_i32 = arith.constant 4 : i32
    %0 = arith.muli %arg0, %c4_i32 : i32
    %1 = arith.addi %0, %arg2 : i32
    %c0_i32 = arith.constant 0 : i32
    %c0_i32_0 = arith.constant 0 : i32
    return %1, %arg1, %c0_i32 : i32, i32, i32
  }
  func.func @transform_6(%arg0: i32, %arg1: i32, %arg2: i32) -> (i32, i32, i32) {
    %c4_i32 = arith.constant 4 : i32
    %0 = arith.muli %arg0, %c4_i32 : i32
    %1 = arith.addi %0, %arg2 : i32
    %c0_i32 = arith.constant 0 : i32
    %c0_i32_0 = arith.constant 0 : i32
    return %1, %arg1, %c0_i32 : i32, i32, i32
  }
  func.func @transform_7(%arg0: i32, %arg1: i32, %arg2: i32) -> (i32, i32, i32) {
    %c4_i32 = arith.constant 4 : i32
    %0 = arith.muli %arg0, %c4_i32 : i32
    %1 = arith.addi %0, %arg2 : i32
    %c0_i32 = arith.constant 0 : i32
    %c0_i32_0 = arith.constant 0 : i32
    return %1, %arg1, %c0_i32 : i32, i32, i32
  }
}

module attributes {stable_mosaic.version = 11 : i64} {
  func.func @ln_linear_kernel(%arg0: i32, %arg1: i32, %arg2: memref<16x32xf32, #tpu.memory_space<vmem>>, %arg3: memref<1x32xf32, #tpu.memory_space<vmem>>, %arg4: memref<1x32xf32, #tpu.memory_space<vmem>>, %arg5: memref<32x64xbf16, #tpu.memory_space<vmem>>, %arg6: memref<1x64xf32, #tpu.memory_space<vmem>>, %arg7: memref<16x64xbf16, #tpu.memory_space<vmem>>, %arg8: memref<16x32xbf16, #tpu.memory_space<vmem>>) attributes {dimension_semantics = [#tpu.dimension_semantics<parallel>, #tpu.dimension_semantics<arbitrary>], iteration_bounds = array<i64: 1, 1>, scalar_prefetch = 0 : i64, scratch_operands = 1 : i64, tpu.core_type = #tpu.core_type<tc>, window_params = [{transform_indices = @transform_0, window_bounds = array<i64: 16, 32>}, {pipeline_mode = #tpu.pipeline_mode<synchronous>, transform_indices = @transform_1, window_bounds = array<i64: 1, 32>}, {pipeline_mode = #tpu.pipeline_mode<synchronous>, transform_indices = @transform_2, window_bounds = array<i64: 1, 32>}, {transform_indices = @transform_3, window_bounds = array<i64: 32, 64>}, {transform_indices = @transform_4, window_bounds = array<i64: 1, 64>}, {transform_indices = @transform_5, window_bounds = array<i64: 16, 64>}]} {
    %c0_i32 = arith.constant 0 : i32
    %0 = arith.cmpi eq, %arg1, %c0_i32 : i32
    %1 = arith.extui %0 : i1 to i32
    %c0_i32_0 = arith.constant 0 : i32
    %2 = arith.cmpi ne, %1, %c0_i32_0 : i32
    scf.if %2 {
      %c0_9 = arith.constant 0 : index
      %c0_10 = arith.constant 0 : index
      %13 = vector.load %arg2[%c0_9, %c0_10] : memref<16x32xf32, #tpu.memory_space<vmem>>, vector<16x32xf32>
      %cst_11 = arith.constant dense<0.000000e+00> : vector<16xf32>
      %14 = vector.multi_reduction <add>, %13, %cst_11 [1] : vector<16x32xf32> to vector<16xf32>
      %15 = vector.shape_cast %14 : vector<16xf32> to vector<16x1xf32>
      %cst_12 = arith.constant 3.200000e+01 : f32
      %16 = vector.broadcast %cst_12 : f32 to vector<16x1xf32>
      %17 = arith.divf %15, %16 : vector<16x1xf32>
      %18 = vector.broadcast %17 : vector<16x1xf32> to vector<16x32xf32>
      %19 = arith.subf %13, %18 : vector<16x32xf32>
      %20 = arith.mulf %19, %19 : vector<16x32xf32>
      %cst_13 = arith.constant dense<0.000000e+00> : vector<16xf32>
      %21 = vector.multi_reduction <add>, %20, %cst_13 [1] : vector<16x32xf32> to vector<16xf32>
      %22 = vector.shape_cast %21 : vector<16xf32> to vector<16x1xf32>
      %cst_14 = arith.constant 3.200000e+01 : f32
      %23 = vector.broadcast %cst_14 : f32 to vector<16x1xf32>
      %24 = arith.divf %22, %23 : vector<16x1xf32>
      %25 = vector.broadcast %17 : vector<16x1xf32> to vector<16x32xf32>
      %26 = arith.subf %13, %25 : vector<16x32xf32>
      %cst_15 = arith.constant 9.99999974E-6 : f32
      %27 = vector.broadcast %cst_15 : f32 to vector<16x1xf32>
      %28 = arith.addf %24, %27 : vector<16x1xf32>
      %29 = math.rsqrt %28 : vector<16x1xf32>
      %30 = vector.broadcast %29 : vector<16x1xf32> to vector<16x32xf32>
      %31 = arith.mulf %26, %30 : vector<16x32xf32>
      %c0_16 = arith.constant 0 : index
      %c0_17 = arith.constant 0 : index
      %32 = vector.load %arg3[%c0_16, %c0_17] : memref<1x32xf32, #tpu.memory_space<vmem>>, vector<1x32xf32>
      %33 = vector.broadcast %32 : vector<1x32xf32> to vector<16x32xf32>
      %34 = arith.mulf %31, %33 : vector<16x32xf32>
      %c0_18 = arith.constant 0 : index
      %c0_19 = arith.constant 0 : index
      %35 = vector.load %arg4[%c0_18, %c0_19] : memref<1x32xf32, #tpu.memory_space<vmem>>, vector<1x32xf32>
      %36 = vector.broadcast %35 : vector<1x32xf32> to vector<16x32xf32>
      %37 = arith.addf %34, %36 : vector<16x32xf32>
      %38 = arith.truncf %37 : vector<16x32xf32> to vector<16x32xbf16>
      %c0_20 = arith.constant 0 : index
      %c0_21 = arith.constant 0 : index
      %39 = vector.load %arg8[%c0_20, %c0_21] : memref<16x32xbf16, #tpu.memory_space<vmem>>, vector<16x32xbf16>
      tpu.vector_store %arg8[%c0_20, %c0_21], %38 {strides = array<i32>} : memref<16x32xbf16, #tpu.memory_space<vmem>>, vector<16x32xbf16>,
    } else {
    }
    %c0 = arith.constant 0 : index
    %c0_1 = arith.constant 0 : index
    %3 = vector.load %arg8[%c0, %c0_1] : memref<16x32xbf16, #tpu.memory_space<vmem>>, vector<16x32xbf16>
    %c0_2 = arith.constant 0 : index
    %c0_3 = arith.constant 0 : index
    %4 = vector.load %arg5[%c0_2, %c0_3] : memref<32x64xbf16, #tpu.memory_space<vmem>>, vector<32x64xbf16>
    %cst = arith.constant dense<0.000000e+00> : vector<16x64xf32>
    %5 = tpu.matmul %3, %4, %cst {dimension_numbers = #tpu.dot_dimension_numbers<[1], [0], [0], [1], [0, 0, 1, 1], [], []>} : vector<16x32xbf16>, vector<32x64xbf16>, vector<16x64xf32> -> vector<16x64xf32>
    %c0_4 = arith.constant 0 : index
    %c0_5 = arith.constant 0 : index
    %6 = vector.load %arg6[%c0_4, %c0_5] : memref<1x64xf32, #tpu.memory_space<vmem>>, vector<1x64xf32>
    %7 = vector.broadcast %6 : vector<1x64xf32> to vector<16x64xf32>
    %8 = arith.addf %5, %7 : vector<16x64xf32>
    %cst_6 = arith.constant 0.000000e+00 : f32
    %9 = vector.broadcast %cst_6 : f32 to vector<16x64xf32>
    %10 = arith.maximumf %8, %9 : vector<16x64xf32>
    %11 = arith.truncf %10 : vector<16x64xf32> to vector<16x64xbf16>
    %c0_7 = arith.constant 0 : index
    %c0_8 = arith.constant 0 : index
    %12 = vector.load %arg7[%c0_7, %c0_8] : memref<16x64xbf16, #tpu.memory_space<vmem>>, vector<16x64xbf16>
    tpu.vector_store %arg7[%c0_7, %c0_8], %11 {strides = array<i32>} : memref<16x64xbf16, #tpu.memory_space<vmem>>, vector<16x64xbf16>,
    return
  }
  func.func @transform_0(%arg0: i32, %arg1: i32) -> (i32, i32) {
    %c0_i32 = arith.constant 0 : i32
    %c0_i32_0 = arith.constant 0 : i32
    return %arg0, %c0_i32 : i32, i32
  }
  func.func @transform_1(%arg0: i32, %arg1: i32) -> (i32, i32) {
    %c0_i32 = arith.constant 0 : i32
    %c0_i32_0 = arith.constant 0 : i32
    %c0_i32_1 = arith.constant 0 : i32
    return %c0_i32, %c0_i32_0 : i32, i32
  }
  func.func @transform_2(%arg0: i32, %arg1: i32) -> (i32, i32) {
    %c0_i32 = arith.constant 0 : i32
    %c0_i32_0 = arith.constant 0 : i32
    %c0_i32_1 = arith.constant 0 : i32
    return %c0_i32, %c0_i32_0 : i32, i32
  }
  func.func @transform_3(%arg0: i32, %arg1: i32) -> (i32, i32) {
    %c0_i32 = arith.constant 0 : i32
    %c0_i32_0 = arith.constant 0 : i32
    return %c0_i32, %arg1 : i32, i32
  }
  func.func @transform_4(%arg0: i32, %arg1: i32) -> (i32, i32) {
    %c0_i32 = arith.constant 0 : i32
    %c0_i32_0 = arith.constant 0 : i32
    return %c0_i32, %arg1 : i32, i32
  }
  func.func @transform_5(%arg0: i32, %arg1: i32) -> (i32, i32) {
    %c0_i32 = arith.constant 0 : i32
    return %arg0, %arg1 : i32, i32
  }
}

module attributes {stable_mosaic.version = 11 : i64} {
  func.func @linear_residual_kernel(%arg0: i32, %arg1: i32, %arg2: i32, %arg3: memref<16x64xbf16, #tpu.memory_space<vmem>>, %arg4: memref<64x32xbf16, #tpu.memory_space<vmem>>, %arg5: memref<1x32xf32, #tpu.memory_space<vmem>>, %arg6: memref<16x32xf32, #tpu.memory_space<vmem>>, %arg7: memref<16x32xf32, #tpu.memory_space<vmem>>, %arg8: memref<16x32xf32, #tpu.memory_space<vmem>>) attributes {dimension_semantics = [#tpu.dimension_semantics<parallel>, #tpu.dimension_semantics<parallel>, #tpu.dimension_semantics<arbitrary>], iteration_bounds = array<i64: 1, 1, 1>, scalar_prefetch = 0 : i64, scratch_operands = 1 : i64, tpu.core_type = #tpu.core_type<tc>, window_params = [{transform_indices = @transform_0, window_bounds = array<i64: 16, 64>}, {transform_indices = @transform_1, window_bounds = array<i64: 64, 32>}, {transform_indices = @transform_2, window_bounds = array<i64: 1, 32>}, {transform_indices = @transform_3, window_bounds = array<i64: 16, 32>}, {transform_indices = @transform_4, window_bounds = array<i64: 16, 32>}]} {
    %c0_i32 = arith.constant 0 : i32
    %0 = arith.cmpi eq, %arg2, %c0_i32 : i32
    %1 = arith.extui %0 : i1 to i32
    %c0_i32_0 = arith.constant 0 : i32
    %2 = arith.cmpi ne, %1, %c0_i32_0 : i32
    scf.if %2 {
      %cst_10 = arith.constant 0.000000e+00 : f32
      %12 = vector.broadcast %cst_10 : f32 to vector<16x32xf32>
      %c0_11 = arith.constant 0 : index
      %c0_12 = arith.constant 0 : index
      %13 = vector.load %arg8[%c0_11, %c0_12] : memref<16x32xf32, #tpu.memory_space<vmem>>, vector<16x32xf32>
      tpu.vector_store %arg8[%c0_11, %c0_12], %12 {strides = array<i32>} : memref<16x32xf32, #tpu.memory_space<vmem>>, vector<16x32xf32>,
    } else {
    }
    %c0 = arith.constant 0 : index
    %c0_1 = arith.constant 0 : index
    %3 = vector.load %arg8[%c0, %c0_1] : memref<16x32xf32, #tpu.memory_space<vmem>>, vector<16x32xf32>
    %c0_2 = arith.constant 0 : index
    %c0_3 = arith.constant 0 : index
    %4 = vector.load %arg3[%c0_2, %c0_3] : memref<16x64xbf16, #tpu.memory_space<vmem>>, vector<16x64xbf16>
    %c0_4 = arith.constant 0 : index
    %c0_5 = arith.constant 0 : index
    %5 = vector.load %arg4[%c0_4, %c0_5] : memref<64x32xbf16, #tpu.memory_space<vmem>>, vector<64x32xbf16>
    %cst = arith.constant dense<0.000000e+00> : vector<16x32xf32>
    %6 = tpu.matmul %4, %5, %cst {dimension_numbers = #tpu.dot_dimension_numbers<[1], [0], [0], [1], [0, 0, 1, 1], [], []>} : vector<16x64xbf16>, vector<64x32xbf16>, vector<16x32xf32> -> vector<16x32xf32>
    %7 = arith.addf %3, %6 : vector<16x32xf32>
    %c0_6 = arith.constant 0 : index
    %c0_7 = arith.constant 0 : index
    %8 = vector.load %arg8[%c0_6, %c0_7] : memref<16x32xf32, #tpu.memory_space<vmem>>, vector<16x32xf32>
    tpu.vector_store %arg8[%c0_6, %c0_7], %7 {strides = array<i32>} : memref<16x32xf32, #tpu.memory_space<vmem>>, vector<16x32xf32>,
    %c0_i32_8 = arith.constant 0 : i32
    %9 = arith.cmpi eq, %arg2, %c0_i32_8 : i32
    %10 = arith.extui %9 : i1 to i32
    %c0_i32_9 = arith.constant 0 : i32
    %11 = arith.cmpi ne, %10, %c0_i32_9 : i32
    scf.if %11 {
      %c0_10 = arith.constant 0 : index
      %c0_11 = arith.constant 0 : index
      %12 = vector.load %arg8[%c0_10, %c0_11] : memref<16x32xf32, #tpu.memory_space<vmem>>, vector<16x32xf32>
      %c0_12 = arith.constant 0 : index
      %c0_13 = arith.constant 0 : index
      %13 = vector.load %arg5[%c0_12, %c0_13] : memref<1x32xf32, #tpu.memory_space<vmem>>, vector<1x32xf32>
      %14 = vector.broadcast %13 : vector<1x32xf32> to vector<16x32xf32>
      %15 = arith.addf %12, %14 : vector<16x32xf32>
      %c0_14 = arith.constant 0 : index
      %c0_15 = arith.constant 0 : index
      %16 = vector.load %arg6[%c0_14, %c0_15] : memref<16x32xf32, #tpu.memory_space<vmem>>, vector<16x32xf32>
      %17 = arith.addf %15, %16 : vector<16x32xf32>
      %c0_16 = arith.constant 0 : index
      %c0_17 = arith.constant 0 : index
      %18 = vector.load %arg7[%c0_16, %c0_17] : memref<16x32xf32, #tpu.memory_space<vmem>>, vector<16x32xf32>
      tpu.vector_store %arg7[%c0_16, %c0_17], %17 {strides = array<i32>} : memref<16x32xf32, #tpu.memory_space<vmem>>, vector<16x32xf32>,
    } else {
    }
    return
  }
  func.func @transform_0(%arg0: i32, %arg1: i32, %arg2: i32) -> (i32, i32) {
    %c0_i32 = arith.constant 0 : i32
    return %arg0, %arg2 : i32, i32
  }
  func.func @transform_1(%arg0: i32, %arg1: i32, %arg2: i32) -> (i32, i32) {
    %c0_i32 = arith.constant 0 : i32
    return %arg2, %arg1 : i32, i32
  }
  func.func @transform_2(%arg0: i32, %arg1: i32, %arg2: i32) -> (i32, i32) {
    %c0_i32 = arith.constant 0 : i32
    %c0_i32_0 = arith.constant 0 : i32
    return %c0_i32, %arg1 : i32, i32
  }
  func.func @transform_3(%arg0: i32, %arg1: i32, %arg2: i32) -> (i32, i32) {
    %c0_i32 = arith.constant 0 : i32
    return %arg0, %arg1 : i32, i32
  }
  func.func @transform_4(%arg0: i32, %arg1: i32, %arg2: i32) -> (i32, i32) {
    %c0_i32 = arith.constant 0 : i32
    return %arg0, %arg1 : i32, i32
  }
}

</mosaic_0001>

<bundles_post_ra>
// kernel: transformer_encoder_layer.7
= control target key start
LH: loop header
LB: loop body
LE: loop exit
PB: predicated region body
PF: predicated region fallthrough
CT: control target
= control target key end

     0   :  { %s653_s15 = smov 0   ;;  %s655_s16 = smov 0   ;;  %s720_s0 = inlined_call_operand.vmem [shape: bf16[8,8,8], index: 0, kind: input, shape index: {}]   ;;  %s721_s1 = inlined_call_operand.vmem [shape: bf16[4,8,32], index: 1, kind: input, shape index: {}]   ;;  %s722_s2 = inlined_call_operand.vmem [shape: f32[1,32], index: 2, kind: input, shape index: {}]   ;;  %s723_s3 = inlined_call_operand.vmem [shape: f32[2,8,32], index: 3, kind: input, shape index: {}]   ;;  %s724_s4 = inlined_call_operand.vmem [shape: f32[2,8,32], index: 4, kind: output, shape index: {}]  }
   0x1   :  { %s657_s17 = smov 0   ;;  %s659_s18 = smov 0  }
   0x2   :  { %s661_s19 = smov 0  }
   0x3 LB: > { %s29_s20 = sadd.s32 1, %s617_s17  ;;  %s40_s21 = sadd.s32 1, %s621_s18  ;;  %s625_s19 = sphi %s661_s19, %s14_s19   ;;  %s621_s18 = sphi %s659_s18, %s728_s18   ;;  %s617_s17 = sphi %s657_s17, %s727_s17   ;;  %s613_s16 = sphi %s655_s16, %s726_s16   ;;  %s609_s15 = sphi %s653_s15, %s725_s15  }
   0x4   : > { %p30_p0 = scmp.ge.s32.totalorder %s29_s20, 4  ;;  %p534_p1 = scmp.ge.s32.totalorder %s625_s19, 1 }
   0x5   : > { %p245_p2 = scmp.lt.s32.totalorder %s625_s19, 9 }
   0x6   : > { %s730_s20 = smov (%p30_p0, %s29_s20), 0  ;;  %s732_s21 = smov (!%p30_p0, %s40_s21), %s621_s18 }
   0x7   : > { %p246_p3 = pnand %p534_p1, %p245_p2  ;;  %p42_p4 = scmp.ge.s32.totalorder %s732_s21, 2 }
   0x8   : > { %s535_s22 = sshll.u32 (!%p246_p3), %s613_s16, 2  ;;  %p311_p5 = scmp.lt.s32.totalorder (!%p246_p3), %s609_s15, 3 }
   0x9   : > { %s734_s21 = smov (%p42_p4, %s732_s21), 0  ;;  %249 = sbr.rel (%p246_p3) target bundleno = 171 (0xab), region = 36 }
   0xa   : > { %s301_s23 = sadd.s32 (!%p246_p3), %s609_s15, %s535_s22  ;;  %p321_p7 = scmp.lt.s32.totalorder (!%p246_p3), %s613_s16, 1 }
   0xb   : > { %p302_p6 = scmp.lt.s32.totalorder (!%p246_p3), %s301_s23, 7  ;;  %p540_p8 = scmp.ne.s32.totalorder (!%p246_p3), %s609_s15, 0 }
   0xe   : > { %s312_s24 = scalar_select %p311_p5, %s609_s15, 3 }
   0xf   : > { %s736_s23 = smov (!%p302_p6, %s301_s23), 7  ;;  %s738_s16 = smov (!%p321_p7, %s613_s16), 1 }
  0x10   : > { %s537_s25 = sshll.u32 %s312_s24, 2  ;;  %s536_s26 = sshll.u32 %s736_s23, 2 }
  0x11   : > { %s317_s29 = scalar_lea.vmem %s721_s1, %s537_s25  ;;  %s308_s6 = scalar_lea.vmem %s720_s0, %s536_s26 }
  0x12   : > { %s538_s7 = sshll.u32 %s738_s16, 3  ;;  %345 = sbr.rel (%p540_p8) target bundleno = 25 (0x19), region = 40 }
  0x13   : > { %s330_s10 = scalar_lea.vmem %s723_s3, %s538_s7  ;;  %s340_s13 = scalar_lea.vmem %s724_s4, %s538_s7 }
  0x17   : > { %vm346_vm0 = vcmask 261120   ;;  %v627_v0 = vmov 0.0  }
  0x18   : > { %347 = vst.msk [vmem:[#allocation2] sm:$0xff] %vm346_vm0, %v627_v0 }
  0x19 PF: > { %v350_v1 = vld [vmem:[%s317_s29] sm:$0xf]  ;;  %vm355_vm1 = vcmask 1043456   ;;  %vm351_vm2 = vcmask 64512   ;;  %vm373_vm3 = vcmask 261120   ;;  %p542_p9 = scmp.ne.s32.totalorder %s609_s15, 3 }
  0x1a   : > { %v357_v2 = vsel %vm355_vm1, %v350_v1, 0  ;;  %v349_v3 = vld [vmem:[%s308_s6] sm:$0xf] }
  0x1b   : > { %366 = vmatpush.bf16.msra.mxu0 %v357_v2 }
  0x1e   : > { %541 = vmatmul.msk.bf16.vlgmr.msra.gmra.mxu0 %vm351_vm2, %v349_v3 }
  0x1f   : > { %v348_v4 = vld [vmem:[#allocation2] sm:$0xff] }
  0x9b   : > { %v368_v5 = vpop.f32.mrf.mxu0 }
  0x9c   : > { %v372_v6 = vadd.f32 %v368_v5, %v348_v4 }
  0x9e   : > { %374 = vst.msk [vmem:[#allocation2] sm:$0xff] %vm373_vm3, %v372_v6 }
  0x9f   : > { %378 = sbr.rel (%p542_p9) target bundleno = 171 (0xab), region = 44 }
  0xa3   : > { %v370_v7 = vpop.f32.mrf.mxu0 }
  0xa4   : > { %v586_v9 = vld [vmem:[%s722_s2] ss:$0 sm:$0xff] }
  0xa5   : > { %v379_v8 = vld [vmem:[#allocation2] sm:$0xff] }
  0xa6   : > { %v385_v10 = vld [vmem:[%s330_s10] sm:$0xff]  ;;  %v384_v11 = vadd.f32 %v586_v9, %v379_v8 }
  0xa8   : > { %v386_v12 = vadd.f32 %v385_v10, %v384_v11 }
  0xaa   : > { %387 = vst.msk [vmem:[%s340_s13] sm:$0xff] %vm373_vm3, %v386_v12 }
  0xab PF: > { %s14_s19 = sadd.s32 1, %s625_s19   ;;  %s725_s15 = smov %s617_s17 }
  0xac   : > { %p11_p10 = scmp.ge.s32.totalorder %s14_s19, 10   ;;  %s726_s16 = smov %s621_s18 }
  0xad   : > { %s727_s17 = smov %s730_s20  ;;  %s728_s18 = smov %s734_s21 }
  0xae   :  { %13 = sbr.rel (!%p11_p10) target bundleno = 3 (0x3), region = 83 }

// kernel: transformer_encoder_layer.6
= control target key start
LH: loop header
LB: loop body
LE: loop exit
PB: predicated region body
PF: predicated region fallthrough
CT: control target
= control target key end

     0   :  { %s567_s12 = smov 0   ;;  %s569_s13 = smov 0   ;;  %s623_s0 = inlined_call_operand.vmem [shape: bf16[8,8,8], index: 0, kind: input, shape index: {}]   ;;  %s624_s1 = inlined_call_operand.vmem [shape: bf16[8,8,8], index: 1, kind: input, shape index: {}]   ;;  %s625_s2 = inlined_call_operand.vmem [shape: bf16[8,8,8], index: 2, kind: input, shape index: {}]   ;;  %s626_s3 = inlined_call_operand.vmem [shape: bf16[8,8,8], index: 3, kind: output, shape index: {}]  }
   0x1   :  { %s571_s14 = smov 0  }
   0x2 LB: > { %s32_s15 = sadd.s32 1, %s538_s13  ;;  %p475_p0 = scmp.ge.s32.totalorder %s542_s14, 1  ;;  %s542_s14 = sphi %s571_s14, %s13_s14   ;;  %s538_s13 = sphi %s569_s13, %s628_s13   ;;  %s534_s12 = sphi %s567_s12, %s627_s12  }
   0x3   : > { %p34_p1 = scmp.ge.s32.totalorder %s32_s15, 8  ;;  %p190_p2 = scmp.lt.s32.totalorder %s542_s14, 9 }
   0x5   : > { %s630_s15 = smov (%p34_p1, %s32_s15), 0  ;;  %p191_p3 = pnand %p475_p0, %p190_p2 }
   0x6   : > { %p232_p4 = scmp.lt.s32.totalorder (!%p191_p3), %s534_s12, 7 }
   0x7   : > { %194 = sbr.rel (%p191_p3) target bundleno = 627 (0x273), region = 32 }
   0xc   : > { %s632_s12 = smov (!%p232_p4, %s534_s12), 7  ;;  %vm268_vm0 = vcmask 64512   ;;  %vm265_vm1 = vcmask 7168   ;;  %v544_v3 = vmov -inf   ;;  %v545_v8 = vmov 0  }
   0xd   : > { %s585_s16 = sshll.u32 %s632_s12, 2  ;;  %266 = vst.msk [vmem:[#allocation2] sm:$0xff] %vm265_vm1, %v544_v3  ;;  %511 = vset.pattern.permute.xlu0 %v545_v8  ;;  %512 = vset.pattern.permute.xlu1 %v545_v8  ;;  %v546_v9 = vmov 0.0   ;;  %vm329_vm2 = vcmask 1043456   ;;  %vm362_vm3 = vcmask 60416  }
   0xe   : > { %s245_s19 = scalar_lea.vmem %s624_s1, %s585_s16  ;;  %s238_s22 = scalar_lea.vmem %s623_s0, %s585_s16  ;;  %513 = vset.pattern.permute.xlu2 %v545_v8  ;;  %267 = vst.msk [vmem:[#allocation3] sm:$0xff] %vm265_vm1, %v546_v9 }
   0xf   : > { %v271_v0 = vld [vmem:[%s245_s19] sm:$0xf]  ;;  %269 = vst.msk [vmem:[#allocation4] sm:$0xff] %vm268_vm0, %v546_v9  ;;  %s252_s25 = scalar_lea.vmem %s625_s2, %s585_s16  ;;  %s259_s28 = scalar_lea.vmem %s626_s3, %s585_s16 }
  0x10   : > { %v277_v1 = vsel %vm268_vm0, %v271_v0, 0  ;;  %v270_v2 = vld [vmem:[%s238_s22] sm:$0xf] }
  0x11   : > { %286 = vmatpush.bf16.xpose.msra.mxu0 %v277_v1  ;;  %v325_v14 = vld [vmem:[%s252_s25] sm:$0xf] }
  0x12   : > { %v331_v15 = vsel %vm329_vm2, %v325_v14, 0 }
  0x13   : > { %340 = vmatpush.bf16.msra.mxu1 %v331_v15 }
  0x14   : > { %v293_v10 = vld [vmem:[#allocation2] sm:$0xff] }
  0x15   : > { %v309_v24 = vld [vmem:[#allocation3] sm:$0xff] }
  0x16   : > { %v317_v32 = vld [vmem:[#allocation4] sm:$0xff] }
  0x18   : > { %480 = vmatmul.msk.bf16.vlgmr.msra.gmra.mxu0 %vm268_vm0, %v270_v2 }
  0x95   : > { %v288_v4 = vpop.f32.mrf.mxu0 }
  0x96   : > { %v292_v5 = vmul.f32 0.35355338, %v288_v4 }
  0x98   : > { %v294_v6 = vsel %vm268_vm0, %v292_v5, -inf }
  0x99   : > { %295 = vmax.xlane.f32.xlu0 %v294_v6 }
  0x9d   : > { %v290_v7 = vpop.f32.mrf.mxu0 }
 0x10c   : > { %v296_v11 = vpop.xlane.xlu0 %295 }
 0x10d   : > { %v297_v12 = vmax.f32 %v293_v10, %v296_v11 }
 0x10f   : > { %v298_v13 = vsub.f32 %v293_v10, %v297_v12  ;;  %348 = vst.msk [vmem:[#allocation2] sm:$0xff] %vm265_vm1, %v297_v12  ;;  %303 = vperm.xlu0 %511, %v297_v12  }
 0x111   : > { %v299_v22 = vmul.f32 1.442695, %v298_v13 }
 0x181   : > { %v304_v16 = vpop.permute.xlu0 %303 }
 0x182   : > { %v306_v17 = vsub.f32 %v292_v5, %v304_v16 }
 0x184   : > { %v307_v18 = vmul.f32 1.442695, %v306_v17 }
 0x186   : > { %514 = vpow2.f32 %v307_v18 }
 0x187   : > { %516 = vpow2.f32 %v299_v22 }
 0x18c   : > { %v515_v19 = vpop.eup %514 }
 0x18d   : > { %v311_v20 = vsel %vm268_vm0, %v515_v19, 0.0  ;;  %v324_v21 = vpack.c.bf16 %v515_v19, %v515_v19  ;;  %v517_v23 = vpop.eup %516 }
 0x18e   : > { %312 = vadd.xlane.f32.xlu1 %v311_v20  ;;  %v310_v25 = vmul.f32 %v517_v23, %v309_v24 }
 0x18f   : > { %481 = vmatmul.msk.bf16.vlgmr.msra.gmra.mxu1 %vm268_vm0, %v324_v21 }
 0x1a7   : > { %320 = vperm.xlu1 %512, %v517_v23  }
 0x201   : > { %v313_v26 = vpop.xlane.xlu1 %312 }
 0x202   : > { %v314_v27 = vadd.f32 %v313_v26, %v310_v25 }
 0x204   : > { %316 = vst.msk [vmem:[#allocation3] sm:$0xff] %vm265_vm1, %v314_v27 }
 0x20b   : > { %v352_v28 = vld [vmem:[#allocation3] sm:$0xff] }
 0x20c   : > { %v342_v29 = vpop.f32.mrf.mxu1  ;;  %518 = vrcp.f32 %v352_v28 }
 0x212   : > { %v519_v30 = vpop.eup %518 }
 0x213   : > { %357 = vperm.xlu2 %513, %v519_v30  }
 0x214   : > { %v344_v31 = vpop.f32.mrf.mxu1 }
 0x219   : > { %v321_v33 = vpop.permute.xlu1 %320 }
 0x21a   : > { %v323_v34 = vmul.f32 %v321_v33, %v317_v32 }
 0x21c   : > { %v346_v35 = vadd.f32 %v342_v29, %v323_v34 }
 0x21e   : > { %347 = vst.msk [vmem:[#allocation4] sm:$0xff] %vm268_vm0, %v346_v35 }
 0x225   : > { %v354_v36 = vld [vmem:[#allocation4] sm:$0xff] }
 0x26d   : > { %v358_v37 = vpop.permute.xlu2 %357 }
 0x26e   : > { %v360_v38 = vmul.f32 %v358_v37, %v354_v36 }
 0x270   : > { %v361_v39 = vpack.c.bf16 %v360_v38, %v360_v38 }
 0x272   : > { %363 = vst.msk [vmem:[%s259_s28] sm:$0xf] %vm362_vm3, %v361_v39 }
 0x273 PF: > { %s13_s14 = sadd.s32 1, %s542_s14   ;;  %s627_s12 = smov %s538_s13 }
 0x274   : > { %p10_p5 = scmp.ge.s32.totalorder %s13_s14, 10   ;;  %s628_s13 = smov %s630_s15 }
 0x276   :  { %12 = sbr.rel (!%p10_p5) target bundleno = 2 (0x2), region = 76 }

// kernel: transformer_encoder_layer.5
= control target key start
LH: loop header
LB: loop body
LE: loop exit
PB: predicated region body
PF: predicated region fallthrough
CT: control target
= control target key end

     0   :  { %s882_s24 = smov 0   ;;  %s884_s25 = smov 0   ;;  %s992_s0 = inlined_call_operand.vmem [shape: f32[2,8,32], index: 0, kind: input, shape index: {}]   ;;  %s993_s1 = inlined_call_operand.vmem [shape: f32[1,32], index: 1, kind: input, shape index: {}]   ;;  %s994_s2 = inlined_call_operand.vmem [shape: f32[1,32], index: 2, kind: input, shape index: {}]   ;;  %s995_s3 = inlined_call_operand.vmem [shape: bf16[4,32,24], index: 3, kind: input, shape index: {}]   ;;  %s996_s4 = inlined_call_operand.vmem [shape: f32[4,1,24], index: 4, kind: input, shape index: {}]   ;;  %s997_s5 = inlined_call_operand.vmem [shape: bf16[8,8,8], index: 5, kind: output, shape index: {0}]   ;;  %s998_s6 = inlined_call_operand.vmem [shape: bf16[8,8,8], index: 6, kind: output, shape index: {1}]   ;;  %s999_s7 = inlined_call_operand.vmem [shape: bf16[8,8,8], index: 7, kind: output, shape index: {2}]  }
   0x1   :  { %s886_s26 = smov 0   ;;  %s888_s27 = smov 0  }
   0x2   :  { %s890_s28 = smov 0  }
   0x3 LB: > { %s30_s29 = sadd.s32 1, %s829_s26  ;;  %s37_s30 = sadd.s32 1, %s833_s27  ;;  %s837_s28 = sphi %s890_s28, %s18_s28   ;;  %s833_s27 = sphi %s888_s27, %s1003_s27   ;;  %s829_s26 = sphi %s886_s26, %s1002_s26   ;;  %s825_s25 = sphi %s884_s25, %s1001_s25   ;;  %s821_s24 = sphi %s882_s24, %s1000_s24  }
   0x4   : > { %p31_p0 = scmp.ge.s32.totalorder %s30_s29, 4  ;;  %p724_p1 = scmp.ge.s32.totalorder %s837_s28, 1 }
   0x5   : > { %p301_p2 = scmp.lt.s32.totalorder %s837_s28, 9 }
   0x6   : > { %s1005_s29 = smov (%p31_p0, %s30_s29), 0  ;;  %s1007_s30 = smov (!%p31_p0, %s37_s30), %s833_s27 }
   0x7   : > { %p302_p3 = pnand %p724_p1, %p301_p2  ;;  %p39_p4 = scmp.ge.s32.totalorder %s1007_s30, 2 }
   0x8   : > { %p365_p5 = scmp.lt.s32.totalorder (!%p302_p3), %s825_s25, 1  ;;  %p372_p6 = scmp.lt.s32.totalorder (!%p302_p3), %s821_s24, 3 }
   0x9   : > { %s1009_s30 = smov (%p39_p4, %s1007_s30), 0  ;;  %305 = sbr.rel (%p302_p3) target bundleno = 559 (0x22f), region = 40 }
   0xa   : > { %s728_s8 = sshll.u32 (!%p302_p3), %s825_s25, 2  ;;  %p734_p8 = scmp.ne.s32.totalorder (!%p302_p3), %s821_s24, 0 }
   0xb   : > { %s381_s11 = sadd.s32 (!%p302_p3), %s821_s24, %s728_s8 }
   0xc   : > { %p382_p7 = scmp.lt.s32.totalorder (!%p302_p3), %s381_s11, 7 }
   0xe   : > { %s1011_s25 = smov (!%p365_p5, %s825_s25), 1  ;;  %s1013_s11 = smov (!%p382_p7, %s381_s11), 7 }
   0xf   : > { %s916_s9 = scalar_select %p372_p6, %s821_s24, 3 }
  0x10   : > { %s725_s10 = sshll.u32 %s1011_s25, 3  ;;  %s932_s22 = sshll.u32 %s1013_s11, 2 }
  0x11   : > { %s371_s14 = scalar_lea.vmem %s992_s0, %s725_s10  ;;  %s746_s15 = sshll.u32 %s916_s9, 4 }
  0x12   : > { %s926_s18 = scalar_lea.vmem %s995_s3, %s746_s15  ;;  %s379_s21 = scalar_lea.vmem %s996_s4, %s916_s9 }
  0x13   : > { %s388_s8 = scalar_lea.vmem %s997_s5, %s932_s22  ;;  %s399_s13 = scalar_lea.vmem %s998_s6, %s932_s22 }
  0x14   : > { %s410_s17 = scalar_lea.vmem %s999_s7, %s932_s22  ;;  %417 = sbr.rel (%p734_p8) target bundleno = 297 (0x129), region = 44 }
  0x19   : > { %v418_v0 = vld [vmem:[%s371_s14] sm:$0xff]  ;;  %vm419_vm0 = vcmask 261120   ;;  %v839_v2 = vmov 32.0   ;;  %vm460_vm5 = vcmask 257024  }
  0x1a   : > { %v420_v1 = vsel %vm419_vm0, %v418_v0, 0.0  ;;  %794 = vrcp.f32 %v839_v2  ;;  %v792_v23 = vld [vmem:[%s993_s1] ss:$0 sm:$0xff] }
  0x1b   : > { %421 = vadd.xlane.f32.xlu0 %v420_v1  ;;  %v793_v25 = vld [vmem:[%s994_s2] ss:$0 sm:$0xff] }
  0x20   : > { %v795_v3 = vpop.eup %794 }
  0x21   : > { %v424_v4 = vmul.f32 32.0, %v795_v3  ;;  %vm428_vm1 = vweird.f32 %v795_v3 }
  0x23   : > { %v425_v5 = vsub.f32 1.0, %v424_v4 }
  0x25   : > { %v426_v6 = vmul.f32 %v795_v3, %v425_v5 }
  0x27   : > { %v427_v7 = vadd.f32 %v795_v3, %v426_v6 }
  0x29   : > { %v429_v8 = vsel %vm428_vm1, %v795_v3, %v427_v7 }
  0x8e   : > { %v422_v9 = vpop.xlane.xlu0 %421 }
  0x8f   : > { %v430_v10 = vmul.f32 %v429_v8, %v422_v9 }
  0x91   : > { %v431_v11 = vsub.f32 %v418_v0, %v430_v10 }
  0x93   : > { %v432_v12 = vmul.f32 %v431_v11, %v431_v11 }
  0x95   : > { %v433_v13 = vsel %vm419_vm0, %v432_v12, 0.0 }
  0x96   : > { %434 = vadd.xlane.f32.xlu0 %v433_v13 }
 0x109   : > { %v435_v14 = vpop.xlane.xlu0 %434 }
 0x10a   : > { %v436_v15 = vmul.f32 %v435_v14, %v429_v8 }
 0x10c   : > { %v437_v16 = vadd.f32 1e-05, %v436_v15 }
 0x10e   : > { %796 = vrsqrt.f32 %v437_v16  ;;  %vm444_vm3 = vweird.f32 %v437_v16 }
 0x114   : > { %v797_v17 = vpop.eup %796 }
 0x115   : > { %v439_v18 = vmul.f32 %v797_v17, %v437_v16  ;;  %vm445_vm2 = vweird.f32 %v797_v17 }
 0x116   : > { %vm446_vm4 = vmor %vm444_vm3, %vm445_vm2 }
 0x117   : > { %v440_v19 = vmul.f32 %v797_v17, %v439_v18 }
 0x119   : > { %v441_v20 = vmul.f32 0.5, %v440_v19 }
 0x11b   : > { %v442_v21 = vsub.f32 1.5, %v441_v20 }
 0x11d   : > { %v443_v22 = vmul.f32 %v797_v17, %v442_v21 }
 0x11f   : > { %v447_v24 = vsel %vm446_vm4, %v797_v17, %v443_v22 }
 0x120   : > { %v448_v26 = vmul.f32 %v447_v24, %v431_v11 }
 0x122   : > { %v453_v27 = vmul.f32 %v792_v23, %v448_v26 }
 0x124   : > { %v458_v28 = vadd.f32 %v793_v25, %v453_v27 }
 0x126   : > { %v459_v29 = vpack.c.bf16 %v458_v28, %v458_v28 }
 0x128   : > { %461 = vst.msk [vmem:[#allocation2] sm:$0xf] %vm460_vm5, %v459_v29 }
 0x129 PF: > { %v748_v30 = vld [vmem:[%s926_s18 + $0x8] sm:$0xff]  ;;  %v747_v31 = vld [vmem:[%s926_s18] sm:$0xff]  ;;  %vm483_vm6 = vcmask 261120   ;;  %vm501_vm7 = vcmask 60416   ;;  %s840_s25 = smov 120   ;;  %s841_s18 = smov 112  }
 0x12a   : > { %493 = vmatpush.bf16.msra.mxu0 %v748_v30  ;;  %v798_v33 = vld [vmem:[%s379_s21] ss:$0 sm:$0xff] }
 0x12e   : > { %494 = vmatpush.bf16.msra.mxu0 %v747_v31 }
 0x12f   : > { %v462_v32 = vld [vmem:[#allocation2] sm:$0xf] }
 0x131   : > { %743 = vmatmul.msk.bf16.vlgmr.msra.gmra.mxu0 %vm483_vm6, %v462_v32 }
 0x1ae   : > { %v496_v34 = vpop.f32.mrf.mxu0 }
 0x1af   : > { %v497_v35 = vadd.f32 %v798_v33, %v496_v34 }
 0x1b1   : > { %v500_v36 = vpack.c.bf16 %v497_v35, %v497_v35 }
 0x1b3   : > { %504 = vrot.lane.b32.xlu0 %v500_v36, %s840_s25  ;;  %502 = vst.msk [vmem:[%s388_s8] sm:$0xf] %vm501_vm7, %v500_v36 }
 0x1b6   : > { %v498_v37 = vpop.f32.mrf.mxu0 }
 0x1bb   : > { %508 = vrot.lane.b32.xlu0 %v500_v36, %s841_s18 }
 0x225   : > { %v505_v38 = vpop.permute.xlu0 %504 }
 0x226   : > { %507 = vst.msk [vmem:[%s399_s13] sm:$0xf] %vm501_vm7, %v505_v38 }
 0x22d   : > { %v509_v39 = vpop.permute.xlu0 %508 }
 0x22e   : > { %511 = vst.msk [vmem:[%s410_s17] sm:$0xf] %vm501_vm7, %v509_v39 }
 0x22f PF: > { %s18_s28 = sadd.s32 1, %s837_s28   ;;  %s1000_s24 = smov %s829_s26 }
 0x230   : > { %p15_p9 = scmp.ge.s32.totalorder %s18_s28, 10   ;;  %s1001_s25 = smov %s833_s27 }
 0x231   : > { %s1002_s26 = smov %s1005_s29  ;;  %s1003_s27 = smov %s1009_s30 }
 0x232   :  { %17 = sbr.rel (!%p15_p9) target bundleno = 3 (0x3), region = 104 }

// kernel: transformer_encoder_layer.8
= control target key start
LH: loop header
LB: loop body
LE: loop exit
PB: predicated region body
PF: predicated region fallthrough
CT: control target
= control target key end

     0   :  { %vm27_vm0 = vcmask 261120   ;;  %v178_v4 = vmov 32.0   ;;  %vm93_vm6 = vcmask 257024   ;;  %vm145_vm9 = vcmask 519168   ;;  %s241_s0 = inlined_call_operand.vmem [shape: f32[16,32], index: 0, kind: input, shape index: {}]   ;;  %s242_s1 = inlined_call_operand.vmem [shape: f32[1,32], index: 1, kind: input, shape index: {}]   ;;  %s243_s2 = inlined_call_operand.vmem [shape: f32[1,32], index: 2, kind: input, shape index: {}]   ;;  %s244_s4 = inlined_call_operand.vmem [shape: f32[1,64], index: 4, kind: input, shape index: {}]   ;;  %s245_s3 = inlined_call_operand.vmem [shape: bf16[32,64], index: 3, kind: input, shape index: {}]   ;;  %s246_s5 = inlined_call_operand.vmem [shape: bf16[16,64], index: 5, kind: output, shape index: {}]  }
   0x1   :  { %v25_v0 = vld [vmem:[%s241_s0] sm:$0xff]  ;;  %v26_v2 = vld [vmem:[%s241_s0 + $0x8] sm:$0xff]  ;;  %172 = vrcp.f32 %v178_v4 }
   0x2   :  { %v28_v1 = vsel %vm27_vm0, %v25_v0, 0.0  ;;  %v31_v3 = vsel %vm27_vm0, %v26_v2, 0.0  ;;  %v167_v24 = vld [vmem:[%s245_s3 + $0x8] sm:$0xff]  ;;  %v166_v27 = vld [vmem:[%s245_s3] sm:$0xff] }
   0x3   :  { %29 = vadd.xlane.f32.xlu0 %v28_v1  ;;  %133 = vmatpush.bf16.msra.mxu0 %v167_v24  ;;  %v169_v37 = vld [vmem:[%s242_s1] ss:$0 sm:$0xff] }
   0x4   :  { %v170_v40 = vld [vmem:[%s243_s2] ss:$0 sm:$0xff] }
   0x5   :  { %v171_v54 = vld [vmem:[%s244_s4] ss:$0 sm:$0xff] }
   0x7   :  { %v173_v5 = vpop.eup %172  ;;  %134 = vmatpush.bf16.msra.mxu0 %v166_v27 }
   0x8   :  { %v35_v6 = vmul.f32 32.0, %v173_v5  ;;  %vm39_vm1 = vweird.f32 %v173_v5 }
   0xa   :  { %v36_v7 = vsub.f32 1.0, %v35_v6 }
   0xb   :  { %32 = vadd.xlane.f32.xlu0 %v31_v3 }
   0xc   :  { %v37_v8 = vmul.f32 %v173_v5, %v36_v7 }
   0xe   :  { %v38_v9 = vadd.f32 %v173_v5, %v37_v8 }
  0x10   :  { %v40_v10 = vsel %vm39_vm1, %v173_v5, %v38_v9 }
  0x76   :  { %v30_v11 = vpop.xlane.xlu0 %29 }
  0x77   :  { %v41_v12 = vmul.f32 %v40_v10, %v30_v11 }
  0x79   :  { %v43_v13 = vsub.f32 %v25_v0, %v41_v12 }
  0x7b   :  { %v45_v14 = vmul.f32 %v43_v13, %v43_v13 }
  0x7d   :  { %v47_v15 = vsel %vm27_vm0, %v45_v14, 0.0 }
  0x7e   :  { %48 = vadd.xlane.f32.xlu1 %v47_v15  ;;  %v33_v16 = vpop.xlane.xlu0 %32 }
  0x7f   :  { %v42_v17 = vmul.f32 %v40_v10, %v33_v16 }
  0x81   :  { %v44_v18 = vsub.f32 %v26_v2, %v42_v17 }
  0x83   :  { %v46_v19 = vmul.f32 %v44_v18, %v44_v18 }
  0x85   :  { %v50_v20 = vsel %vm27_vm0, %v46_v19, 0.0 }
  0x86   :  { %51 = vadd.xlane.f32.xlu1 %v50_v20 }
  0xf1   :  { %v49_v21 = vpop.xlane.xlu1 %48 }
  0xf2   :  { %v53_v22 = vmul.f32 %v49_v21, %v40_v10 }
  0xf4   :  { %v55_v23 = vadd.f32 1e-05, %v53_v22 }
  0xf6   :  { %174 = vrsqrt.f32 %v55_v23  ;;  %vm63_vm3 = vweird.f32 %v55_v23 }
  0xf9   :  { %v52_v25 = vpop.xlane.xlu1 %51 }
  0xfa   :  { %v54_v26 = vmul.f32 %v52_v25, %v40_v10 }
  0xfc   :  { %v175_v28 = vpop.eup %174  ;;  %v56_v29 = vadd.f32 1e-05, %v54_v26 }
  0xfd   :  { %v58_v30 = vmul.f32 %v175_v28, %v55_v23  ;;  %vm64_vm2 = vweird.f32 %v175_v28 }
  0xfe   :  { %176 = vrsqrt.f32 %v56_v29  ;;  %vm65_vm4 = vmor %vm63_vm3, %vm64_vm2  ;;  %vm73_vm7 = vweird.f32 %v56_v29 }
  0xff   :  { %v59_v31 = vmul.f32 %v175_v28, %v58_v30 }
 0x101   :  { %v60_v32 = vmul.f32 0.5, %v59_v31 }
 0x103   :  { %v61_v33 = vsub.f32 1.5, %v60_v32 }
 0x104   :  { %v177_v34 = vpop.eup %176 }
 0x105   :  { %v62_v35 = vmul.f32 %v175_v28, %v61_v33  ;;  %v68_v36 = vmul.f32 %v177_v34, %v56_v29  ;;  %vm74_vm5 = vweird.f32 %v177_v34 }
 0x106   :  { %vm75_vm8 = vmor %vm73_vm7, %vm74_vm5 }
 0x107   :  { %v66_v38 = vsel %vm65_vm4, %v175_v28, %v62_v35  ;;  %v69_v39 = vmul.f32 %v177_v34, %v68_v36 }
 0x108   :  { %v77_v41 = vmul.f32 %v66_v38, %v43_v13 }
 0x109   :  { %v70_v42 = vmul.f32 0.5, %v69_v39 }
 0x10a   :  { %v83_v43 = vmul.f32 %v169_v37, %v77_v41 }
 0x10b   :  { %v71_v44 = vsub.f32 1.5, %v70_v42 }
 0x10c   :  { %v89_v45 = vadd.f32 %v170_v40, %v83_v43 }
 0x10d   :  { %v72_v46 = vmul.f32 %v177_v34, %v71_v44 }
 0x10e   :  { %v91_v47 = vpack.c.bf16 %v89_v45, %v89_v45 }
 0x10f   :  { %v76_v48 = vsel %vm75_vm8, %v177_v34, %v72_v46 }
 0x110   :  { %94 = vst.msk [vmem:[#allocation2] sm:$0xf] %vm93_vm6, %v91_v47  ;;  %v78_v49 = vmul.f32 %v76_v48, %v44_v18 }
 0x112   :  { %v84_v50 = vmul.f32 %v169_v37, %v78_v49 }
 0x114   :  { %v90_v51 = vadd.f32 %v170_v40, %v84_v50 }
 0x116   :  { %v92_v52 = vpack.c.bf16 %v90_v51, %v90_v51 }
 0x118   :  { %95 = vst.msk [vmem:[#allocation2 + $0x4] sm:$0xf] %vm93_vm6, %v92_v52 }
 0x11f   :  { %v165_v53 = vld [vmem:[#allocation2] sm:$0xff] }
 0x120   :  { %164 = vmatmul.msk.bf16.vlgmr.msra.gmra.mxu0 %vm27_vm0, %v165_v53 }
 0x19d   :  { %v136_v55 = vpop.f32.mrf.mxu0 }
 0x19e   :  { %v137_v56 = vadd.f32 %v171_v54, %v136_v55 }
 0x1a0   :  { %v141_v57 = vmax.f32 %v137_v56, 0.0 }
 0x1a2   :  { %v143_v58 = vpack.c.bf16 %v141_v57, %v141_v57 }
 0x1a4   :  { %146 = vst.msk [vmem:[%s246_s5] sm:$0xf] %vm145_vm9, %v143_v58 }
 0x1a5   :  { %v138_v59 = vpop.f32.mrf.mxu0 }
 0x1a6   :  { %v139_v60 = vadd.f32 %v171_v54, %v138_v59 }
 0x1a8   :  { %v142_v61 = vmax.f32 %v139_v60, 0.0 }
 0x1aa   :  { %v144_v62 = vpack.c.bf16 %v142_v61, %v142_v61 }
 0x1ac   :  { %147 = vst.msk [vmem:[%s246_s5 + $0x4] sm:$0xf] %vm145_vm9, %v144_v62 }

// kernel: transformer_encoder_layer.9
= control target key start
LH: loop header
LB: loop body
LE: loop exit
PB: predicated region body
PF: predicated region fallthrough
CT: control target
= control target key end

     0   :  { %vm23_vm0 = vcmask 261120   ;;  %v182_v1 = vmov 0.0   ;;  %s244_s0 = inlined_call_operand.vmem [shape: bf16[16,64], index: 0, kind: input, shape index: {}]   ;;  %s245_s1 = inlined_call_operand.vmem [shape: bf16[64,32], index: 1, kind: input, shape index: {}]   ;;  %s246_s2 = inlined_call_operand.vmem [shape: f32[1,32], index: 2, kind: input, shape index: {}]   ;;  %s247_s3 = inlined_call_operand.vmem [shape: f32[16,32], index: 3, kind: input, shape index: {}]   ;;  %s248_s4 = inlined_call_operand.hbm [shape: f32[16,32], index: 4, kind: output, shape index: {}]  }
   0x1   :  { %v150_v0 = vld [vmem:[%s245_s1 + $0x18] sm:$0xff]  ;;  %24 = vst.msk [vmem:[#allocation2] sm:$0xff] %vm23_vm0, %v182_v1 }
   0x2   :  { %9 = vsyncpa [#allocation4], 0  ;;  %75 = vmatpush.bf16.msra.mxu0 %v150_v0  ;;  %v149_v2 = vld [vmem:[%s245_s1 + $0x10] sm:$0xff]  ;;  %25 = vst.msk [vmem:[#allocation2 + $0x8] sm:$0xff] %vm23_vm0, %v182_v1  ;;  %v148_v3 = vld [vmem:[%s245_s1 + $0x8] sm:$0xff]  ;;  %vm67_vm1 = vcmask 523264  }
   0x3   :  { %v147_v4 = vld [vmem:[%s245_s1] sm:$0xff]  ;;  %s113_s5 = sshll.u32 %s248_s4, 4  ;;  %v102_v18 = vld [vmem:[%s247_s3 + $0x8] sm:$0xff]  ;;  %s184_s7 = smov 128   ;;  %s114_s5 = int_to_ptr.hbm [resolvable:$true] %s113_s5 }
   0x4   :  { %v146_v5 = vld [vmem:[%s244_s0] sm:$0xff]  ;;  %s183_s0 = smov [#allocation3]   ;;  %s185_s8 = smov 8  }
   0x5   :  { %v155_v10 = vld [vmem:[%s246_s2] ss:$0 sm:$0xff]  ;;  %s111_s28 = sshll.u32 %s183_s0, 4  ;;  %s112_s28 = int_to_ptr.vmem [resolvable:$true] %s111_s28 }
   0x6   :  { %76 = vmatpush.bf16.msra.mxu0 %v149_v2  ;;  %v101_v14 = vld [vmem:[%s247_s3] sm:$0xff] }
   0x8   :  { %v26_v6 = vld [vmem:[#allocation2] sm:$0xff] }
   0x9   :  { %v27_v9 = vld [vmem:[#allocation2 + $0x8] sm:$0xff] }
   0xa   :  { %77 = vmatpush.bf16.msra.mxu0 %v148_v3 }
   0xe   :  { %78 = vmatpush.bf16.msra.mxu0 %v147_v4 }
  0x11   :  { %145 = vmatmul.msk.bf16.vlgmr.msra.gmra.mxu0 %vm67_vm1, %v146_v5 }
  0x8e   :  { %v80_v7 = vpop.f32.mrf.mxu0 }
  0x8f   :  { %v85_v8 = vadd.f32 %v80_v7, %v26_v6 }
  0x91   :  { %88 = vst.msk [vmem:[#allocation2] sm:$0xff] %vm23_vm0, %v85_v8 }
  0x96   :  { %v82_v11 = vpop.f32.mrf.mxu0 }
  0x97   :  { %v86_v12 = vadd.f32 %v82_v11, %v27_v9 }
  0x98   :  { %v93_v13 = vld [vmem:[#allocation2] sm:$0xff] }
  0x99   :  { %89 = vst.msk [vmem:[#allocation2 + $0x8] sm:$0xff] %vm23_vm0, %v86_v12  ;;  %v99_v15 = vadd.f32 %v155_v10, %v93_v13 }
  0x9b   :  { %v103_v16 = vadd.f32 %v101_v14, %v99_v15 }
  0x9d   :  { %105 = vst.msk [vmem:[#allocation3] sm:$0xff] %vm23_vm0, %v103_v16 }
  0xa0   :  { %v94_v17 = vld [vmem:[#allocation2 + $0x8] sm:$0xff] }
  0xa1   :  { %v100_v19 = vadd.f32 %v155_v10, %v94_v17 }
  0xa3   :  { %v104_v20 = vadd.f32 %v102_v18, %v100_v19 }
  0xa5   :  { %106 = vst.msk [vmem:[#allocation3 + $0x8] sm:$0xff] %vm23_vm0, %v104_v20 }
  0xa6   :  { %119 = dma.vmem_to_hbm [thread:$0]  %s112_s28, 256, %s114_s5, [#allocation4], %s184_s7, %s184_s7, %s185_s8  }
  0xa7   :  { %180 = dma.done.wait [#allocation4], 256  }
  0xa8   :  { %181 = vsyncadd [#allocation4], 4294967040 }
  0xa9   :  { %124 = vsyncpa [#allocation4], 1 }

</bundles_post_ra>
